<compile_context>
chip_gen: v7x
topology: tpu7x:2x2x1
jax: 0.10.0
libtpu: 0.0.40
codegen_flags: <defaults>
</compile_context>

<pallas_src>
import functools

import jax
import jax.numpy as jnp
from jax.experimental import pallas as pl
from jax.experimental.pallas import tpu as pltpu


def _round_up(x, m):
    return (x + m - 1) // m * m


def _layernorm(x, g, b, eps=1e-5):
    mu = jnp.mean(x, axis=-1, keepdims=True)
    var = jnp.mean(jnp.square(x - mu), axis=-1, keepdims=True)
    return (x - mu) * jax.lax.rsqrt(var + eps) * g + b


def _erf(x):
    # Abramowitz & Stegun 7.1.26 polynomial (|err| < 1.5e-7): keeps PyTorch's
    # exact-GELU semantics without depending on a native erf lowering.
    a1, a2, a3, a4, a5 = (0.254829592, -0.284496736, 1.421413741,
                          -1.453152027, 1.061405429)
    p = 0.3275911
    ax = jnp.abs(x)
    t = 1.0 / (1.0 + p * ax)
    poly = ((((a5 * t + a4) * t + a3) * t + a2) * t + a1) * t
    y = 1.0 - poly * jnp.exp(-ax * ax)
    return jnp.where(x >= 0.0, y, -y)


def _gelu_exact(x):
    return 0.5 * x * (1.0 + _erf(x * 0.7071067811865476))


# Big-but-safe mask value: exp underflows to exactly 0 after max-subtraction,
# without risking -inf overflow if operands are ever narrowed.
_NEG = -1e30


# ------------------------------ fused ViT kernel -----------------------------

def vit_kernel(patches_ref, clspos_ref, eg_ref, eb_ref, ew_ref, ebias_ref,
               ln1g_ref, ln1b_ref, wq_ref, wk_ref, wv_ref, wo_ref, bo_ref,
               scale_ref, ln2g_ref, ln2b_ref, w1_ref, b1_ref, w2_ref, b2_ref,
               hg_ref, hb_ref, hw_ref, hbias_ref,
               out_ref, x_ref,
               *, heads, n_patches, patch_dim):
    d = pl.program_id(1)                       # depth step (inner grid axis)
    n_pad = x_ref.shape[0]                     # padded token count
    n_tok = n_patches + 1                      # real tokens (cls + patches)

    # ---- depth step 0: shifted-patch embedding + cls token + pos embedding ----
    @pl.when(d == 0)
    def _embed():
        p = patches_ref[...].astype(jnp.float32)            # (n_pad, pd_pad)
        pd_pad = p.shape[1]
        # LayerNorm over the *real* patch_dim only (padded lanes are zero).
        lane = jax.lax.broadcasted_iota(jnp.int32, (n_pad, pd_pad), 1)
        mu = jnp.sum(p, axis=-1, keepdims=True) * (1.0 / patch_dim)
        xc = jnp.where(lane < patch_dim, p - mu, 0.0)
        var = jnp.sum(xc * xc, axis=-1, keepdims=True) * (1.0 / patch_dim)
        xn = xc * jax.lax.rsqrt(var + 1e-5) * eg_ref[...] + eb_ref[...]
        tok = jnp.dot(xn.astype(jnp.bfloat16), ew_ref[...],
                      preferred_element_type=jnp.float32) + ebias_ref[...]
        # Row 0 is the cls slot, rows >= n_tok are padding -> zero them, then add
        # the precombined (cls + positional-embedding) table.
        row = jax.lax.broadcasted_iota(jnp.int32, (n_pad, 1), 0)
        keep = (row >= 1) & (row < n_tok)
        x_ref[...] = jnp.where(keep, tok, 0.0) + clspos_ref[...]

    x = x_ref[...]                                           # (n_pad, D) f32, resident in VMEM

    # ---- PreNorm + LSA (diagonal-masked attention, learned temperature) ----
    xn = _layernorm(x, ln1g_ref[...], ln1b_ref[...])
    xn_b = jnp.broadcast_to(xn[None], (heads,) + xn.shape).astype(jnp.bfloat16)
    # wq/wk/wv: (heads, D, dh) -> per-head projections in batched matmuls.
    q = jnp.einsum('hnd,hdk->hnk', xn_b, wq_ref[...],
                   preferred_element_type=jnp.float32)       # (heads, n_pad, dh)
    k = jnp.einsum('hnd,hdk->hnk', xn_b, wk_ref[...],
                   preferred_element_type=jnp.float32)
    v = jnp.einsum('hnd,hdk->hnk', xn_b, wv_ref[...],
                   preferred_element_type=jnp.float32)

    dots = jnp.einsum('hnd,hmd->hnm',
                      q.astype(jnp.bfloat16), k.astype(jnp.bfloat16),
                      preferred_element_type=jnp.float32)    # (heads, n_pad, n_pad)
    dots = dots * scale_ref[...]                             # exp(temperature), runtime (1,1)
    ri = jax.lax.broadcasted_iota(jnp.int32, (n_pad, n_pad), 0)
    ci = jax.lax.broadcasted_iota(jnp.int32, (n_pad, n_pad), 1)
    mask = (ri == ci) | (ci >= n_tok)                        # self-attn diag + padded keys
    dots = jnp.where(mask[None, :, :], _NEG, dots)
    dots = dots - jnp.max(dots, axis=-1, keepdims=True)
    e = jnp.exp(dots)
    attn = e * pl.reciprocal(jnp.sum(e, axis=-1, keepdims=True), approx=True)
    av = jnp.einsum('hnm,hmd->hnd',
                    attn.astype(jnp.bfloat16), v.astype(jnp.bfloat16),
                    preferred_element_type=jnp.float32)      # (heads, n_pad, dh)
    # Output projection folded as a sum over per-head wo slices (no concatenate).
    proj = jnp.einsum('hnd,hdo->hno', av.astype(jnp.bfloat16), wo_ref[...],
                      preferred_element_type=jnp.float32)    # (heads, n_pad, D)
    attn_out = jnp.sum(proj, axis=0) + bo_ref[...]
    y = x + attn_out

    # ---- PreNorm + FeedForward (exact GELU, PyTorch default) ----
    yn = _layernorm(y, ln2g_ref[...], ln2b_ref[...])
    h1 = jnp.dot(yn.astype(jnp.bfloat16), w1_ref[...],
                 preferred_element_type=jnp.float32) + b1_ref[...]
    h1 = _gelu_exact(h1)
    ff = jnp.dot(h1.astype(jnp.bfloat16), w2_ref[...],
                 preferred_element_type=jnp.float32) + b2_ref[...]
    z = y + ff
    x_ref[...] = z                                           # stays resident for next layer

    # ---- last depth step: cls pooling + LayerNorm + classification head ----
    @pl.when(d == pl.num_programs(1) - 1)
    def _head():
        cls = z[0:1, :]                                      # (1, D) cls token
        cn = _layernorm(cls, hg_ref[...], hb_ref[...])
        out_ref[...] = jnp.dot(cn.astype(jnp.bfloat16), hw_ref[...],
                               preferred_element_type=jnp.float32) + hbias_ref[...]


# ------------------------------ plain-JAX glue -------------------------------

def torch_fpad(x, pad):
    # Replicates torch.nn.functional.F.pad(x, (w_l, w_r, h_t, h_b)) on NCHW,
    # including negative pads (crops).
    wl, wr, ht, hb = pad
    x = jnp.pad(x, ((0, 0), (0, 0),
                    (max(ht, 0), max(hb, 0)),
                    (max(wl, 0), max(wr, 0))))
    H, W = x.shape[2], x.shape[3]
    hs = -ht if ht < 0 else 0
    he = H + hb if hb < 0 else H
    ws = -wl if wl < 0 else 0
    we = W + wr if wr < 0 else W
    return x[:, :, hs:he, ws:we]


def spt_patchify(img, patch_size):
    # Shifted Patch Tokenization: concat original + 4 shifted copies along C,
    # then rearrange 'b c (h p1) (w p2) -> b (h w) (p1 p2 c)'.
    shifts = ((1, -1, 0, 0), (-1, 1, 0, 0), (0, 0, 1, -1), (0, 0, -1, 1))
    shifted = [torch_fpad(img, s) for s in shifts]
    x5 = jnp.concatenate([img] + shifted, axis=1)            # (B, 5C, H, W)
    B, C5, H, W = x5.shape
    p = patch_size
    nh, nw = H // p, W // p
    patches = x5.reshape(B, C5, nh, p, nw, p)
    patches = patches.transpose(0, 2, 4, 3, 5, 1)            # (B, nh, nw, p1, p2, c)
    return patches.reshape(B, nh * nw, p * p * C5)


def vit_forward(img, params, *, patch_size, heads, dim_head):
    # TODO(synk): only pool='cls' and inference are implemented (dropout=identity,
    # RevBackProp forward == vanilla forward; custom reversible backward is training-only).
    patches = spt_patchify(img, patch_size)                  # (B, Np, PD)
    B, n_patches, patch_dim = patches.shape
    D = params["e_w"].shape[1]
    depth = params["wq"].shape[0]
    num_classes = params["h_w"].shape[1]
    mlp_dim = params["w1"].shape[2]

    pd_pad = _round_up(patch_dim, 128)                       # lane-align patch_dim
    n_tok = n_patches + 1
    n_pad = _round_up(n_tok, 8)                              # sublane-align tokens
    nc_pad = _round_up(num_classes, 128)                     # lane-dense output store

    # Token row 0 = cls slot (zeros), rows 1..Np = patches, rest = padding.
    patches = jnp.pad(patches, ((0, 0), (1, n_pad - n_tok), (0, pd_pad - patch_dim)))

    # Precombine cls token + positional embedding into one resident table.
    clspos = jnp.zeros((1, n_pad, D), jnp.float32)
    clspos = clspos.at[:, :n_tok].set(params["pos_embedding"][:, :n_tok])
    clspos = clspos.at[:, 0].add(params["cls_token"][:, 0])

    # Lane-pad the embed LayerNorm/Linear params (zeros -> padded lanes inert).
    eg = jnp.pad(params["e_g"], ((0, 0), (0, pd_pad - patch_dim)))
    eb = jnp.pad(params["e_b"], ((0, 0), (0, pd_pad - patch_dim)))
    ew = jnp.pad(params["e_w"], ((0, pd_pad - patch_dim), (0, 0)))

    # Lane-pad the classification head (padded logits are sliced off below).
    hw = jnp.pad(params["h_w"], ((0, 0), (0, nc_pad - num_classes)))
    hbias = jnp.pad(params["h_bias"], ((0, 0), (0, nc_pad - num_classes)))

    # LSA learned temperature -> runtime per-layer scale (not baked into the kernel).
    scales = jnp.exp(params["log_temp"]).reshape(depth, 1, 1).astype(jnp.float32)

    kern = functools.partial(vit_kernel, heads=heads,
                             n_patches=n_patches, patch_dim=patch_dim)

    out = pl.pallas_call(
        kern,
        out_shape=jax.ShapeDtypeStruct((B, 1, nc_pad), jnp.float32),
        grid=(B, depth),
        in_specs=[
            pl.BlockSpec((None, n_pad, pd_pad), lambda b, d: (b, 0, 0)),     # patches
            pl.BlockSpec((None, n_pad, D), lambda b, d: (0, 0, 0)),          # cls+pos
            pl.BlockSpec((1, pd_pad), lambda b, d: (0, 0)),                  # embed LN gamma
            pl.BlockSpec((1, pd_pad), lambda b, d: (0, 0)),                  # embed LN beta
            pl.BlockSpec((pd_pad, D), lambda b, d: (0, 0)),                  # embed W (bf16)
            pl.BlockSpec((1, D), lambda b, d: (0, 0)),                       # embed bias
            pl.BlockSpec((None, 1, D), lambda b, d: (d, 0, 0)),              # ln1 gamma
            pl.BlockSpec((None, 1, D), lambda b, d: (d, 0, 0)),              # ln1 beta
            pl.BlockSpec((None, heads, D, dim_head), lambda b, d: (d, 0, 0, 0)),   # wq (bf16)
            pl.BlockSpec((None, heads, D, dim_head), lambda b, d: (d, 0, 0, 0)),   # wk (bf16)
            pl.BlockSpec((None, heads, D, dim_head), lambda b, d: (d, 0, 0, 0)),   # wv (bf16)
            pl.BlockSpec((None, heads, dim_head, D), lambda b, d: (d, 0, 0, 0)),   # wo (bf16)
            pl.BlockSpec((None, 1, D), lambda b, d: (d, 0, 0)),              # bo
            pl.BlockSpec((None, 1, 1), lambda b, d: (d, 0, 0)),              # attn scale
            pl.BlockSpec((None, 1, D), lambda b, d: (d, 0, 0)),              # ln2 gamma
            pl.BlockSpec((None, 1, D), lambda b, d: (d, 0, 0)),              # ln2 beta
            pl.BlockSpec((None, D, mlp_dim), lambda b, d: (d, 0, 0)),        # w1 (bf16)
            pl.BlockSpec((None, 1, mlp_dim), lambda b, d: (d, 0, 0)),        # b1
            pl.BlockSpec((None, mlp_dim, D), lambda b, d: (d, 0, 0)),        # w2 (bf16)
            pl.BlockSpec((None, 1, D), lambda b, d: (d, 0, 0)),              # b2
            pl.BlockSpec((1, D), lambda b, d: (0, 0)),                       # head LN gamma
            pl.BlockSpec((1, D), lambda b, d: (0, 0)),                       # head LN beta
            pl.BlockSpec((D, nc_pad), lambda b, d: (0, 0)),                  # head W (bf16)
            pl.BlockSpec((1, nc_pad), lambda b, d: (0, 0)),                  # head bias
        ],
        out_specs=pl.BlockSpec((None, 1, nc_pad), lambda b, d: (b, 0, 0)),
        scratch_shapes=[pltpu.VMEM((n_pad, D), jnp.float32)],                # resident tokens
        compiler_params=pltpu.CompilerParams(
            dimension_semantics=("parallel", "arbitrary")),
        # NOTE: at realistic dims (D=768, mlp=3072) tile w1/w2 over features
        # and set vmem_limit_bytes explicitly (v7x has 64 MiB physical VMEM).
    )(patches, clspos, eg, eb, ew, params["e_bias"],
      params["ln1_g"], params["ln1_b"], params["wq"], params["wk"], params["wv"],
      params["wo"], params["bo"], scales,
      params["ln2_g"], params["ln2_b"], params["w1"], params["b1"],
      params["w2"], params["b2"],
      params["h_g"], params["h_b"], hw, hbias)
    return out[:, 0, :num_classes]


# ------------------------------ param init ----------------------------------

def init_params(key, *, channels, image_size, patch_size, dim, depth, heads,
                dim_head, mlp_dim, num_classes):
    num_patches = (image_size // patch_size) ** 2
    patch_dim = patch_size * patch_size * 5 * channels
    keys = iter(jax.random.split(key, 16 + depth * 4))

    def w(shape, dtype=jnp.bfloat16):
        return (0.02 * jax.random.normal(next(keys), shape, jnp.float32)).astype(dtype)

    p = {}
    # SPT: LayerNorm(patch_dim) + Linear(patch_dim, dim).
    p["e_g"] = jnp.ones((1, patch_dim), jnp.float32)
    p["e_b"] = jnp.zeros((1, patch_dim), jnp.float32)
    p["e_w"] = w((patch_dim, dim))
    p["e_bias"] = jnp.zeros((1, dim), jnp.float32)
    p["cls_token"] = jax.random.normal(next(keys), (1, 1, dim), jnp.float32)
    p["pos_embedding"] = jax.random.normal(next(keys), (1, num_patches + 1, dim),
                                           jnp.float32)
    # Transformer layers, stacked along a leading depth axis.
    # wq/wk/wv layout: (depth, heads, dim, dim_head)
    #   (from PyTorch to_qkv.weight (3*inner, dim): take the q/k/v third, reshape
    #    to (heads, dh, dim), transpose to (heads, dim, dh))
    # wo layout: (depth, heads, dim_head, dim) — per-head row block of to_out weight^T.
    p["ln1_g"] = jnp.ones((depth, 1, dim), jnp.float32)
    p["ln1_b"] = jnp.zeros((depth, 1, dim), jnp.float32)
    p["wq"] = w((depth, heads, dim, dim_head))
    p["wk"] = w((depth, heads, dim, dim_head))
    p["wv"] = w((depth, heads, dim, dim_head))
    p["wo"] = w((depth, heads, dim_head, dim))
    p["bo"] = jnp.zeros((depth, 1, dim), jnp.float32)
    # LSA learnable temperature, init log(dim_head ** -0.5) (passed at runtime).
    p["log_temp"] = jnp.full((depth,), jnp.log(dim_head ** -0.5), jnp.float32)
    p["ln2_g"] = jnp.ones((depth, 1, dim), jnp.float32)
    p["ln2_b"] = jnp.zeros((depth, 1, dim), jnp.float32)
    p["w1"] = w((depth, dim, mlp_dim))
    p["b1"] = jnp.zeros((depth, 1, mlp_dim), jnp.float32)
    p["w2"] = w((depth, mlp_dim, dim))
    p["b2"] = jnp.zeros((depth, 1, dim), jnp.float32)
    # Head: LayerNorm(dim) + Linear(dim, num_classes).
    p["h_g"] = jnp.ones((1, dim), jnp.float32)
    p["h_b"] = jnp.zeros((1, dim), jnp.float32)
    p["h_w"] = w((dim, num_classes))
    p["h_bias"] = jnp.zeros((1, num_classes), jnp.float32)
    return p


# --------------------------------- main --------------------------------------

if __name__ == "__main__":
    B, C, IMG, PATCH = 2, 3, 16, 4
    DIM, DEPTH, HEADS, DIM_HEAD, MLP_DIM, NUM_CLASSES = 32, 2, 4, 8, 64, 10

    key = jax.random.PRNGKey(0)
    k_img, k_params = jax.random.split(key)
    img = jax.random.normal(k_img, (B, C, IMG, IMG), jnp.float32)

    params = init_params(k_params, channels=C, image_size=IMG, patch_size=PATCH,
                         dim=DIM, depth=DEPTH, heads=HEADS, dim_head=DIM_HEAD,
                         mlp_dim=MLP_DIM, num_classes=NUM_CLASSES)

    fwd = jax.jit(functools.partial(vit_forward, patch_size=PATCH,
                                    heads=HEADS, dim_head=DIM_HEAD))
    out = fwd(img, params)
    out = jax.block_until_ready(out)
    assert out.shape == (B, NUM_CLASSES)
    print("KERNEL_OK")
</pallas_src>

<mosaic_0001>
module attributes {stable_mosaic.version = 11 : i64} {
  func.func @vit_kernel(%arg0: i32, %arg1: i32, %arg2: memref<1x24x256xf32, #tpu.memory_space<vmem>>, %arg3: memref<1x24x32xf32, #tpu.memory_space<vmem>>, %arg4: memref<1x256xf32, #tpu.memory_space<vmem>>, %arg5: memref<1x256xf32, #tpu.memory_space<vmem>>, %arg6: memref<256x32xbf16, #tpu.memory_space<vmem>>, %arg7: memref<1x32xf32, #tpu.memory_space<vmem>>, %arg8: memref<1x1x32xf32, #tpu.memory_space<vmem>>, %arg9: memref<1x1x32xf32, #tpu.memory_space<vmem>>, %arg10: memref<1x4x32x8xbf16, #tpu.memory_space<vmem>>, %arg11: memref<1x4x32x8xbf16, #tpu.memory_space<vmem>>, %arg12: memref<1x4x32x8xbf16, #tpu.memory_space<vmem>>, %arg13: memref<1x4x8x32xbf16, #tpu.memory_space<vmem>>, %arg14: memref<1x1x32xf32, #tpu.memory_space<vmem>>, %arg15: memref<1x1x1xf32, #tpu.memory_space<vmem>>, %arg16: memref<1x1x32xf32, #tpu.memory_space<vmem>>, %arg17: memref<1x1x32xf32, #tpu.memory_space<vmem>>, %arg18: memref<1x32x64xbf16, #tpu.memory_space<vmem>>, %arg19: memref<1x1x64xf32, #tpu.memory_space<vmem>>, %arg20: memref<1x64x32xbf16, #tpu.memory_space<vmem>>, %arg21: memref<1x1x32xf32, #tpu.memory_space<vmem>>, %arg22: memref<1x32xf32, #tpu.memory_space<vmem>>, %arg23: memref<1x32xf32, #tpu.memory_space<vmem>>, %arg24: memref<32x128xbf16, #tpu.memory_space<vmem>>, %arg25: memref<1x128xf32, #tpu.memory_space<vmem>>, %arg26: memref<1x1x128xf32, #tpu.memory_space<vmem>>, %arg27: memref<24x32xf32, #tpu.memory_space<vmem>>) attributes {dimension_semantics = [#tpu.dimension_semantics<parallel>, #tpu.dimension_semantics<arbitrary>], iteration_bounds = array<i64: 2, 2>, scalar_prefetch = 0 : i64, scratch_operands = 1 : i64, tpu.core_type = #tpu.core_type<tc>, window_params = [{transform_indices = @transform_0, window_bounds = array<i64: 1, 24, 256>}, {pipeline_mode = #tpu.pipeline_mode<synchronous>, transform_indices = @transform_1, window_bounds = array<i64: 1, 24, 32>}, {pipeline_mode = #tpu.pipeline_mode<synchronous>, transform_indices = @transform_2, window_bounds = array<i64: 1, 256>}, {pipeline_mode = #tpu.pipeline_mode<synchronous>, transform_indices = @transform_3, window_bounds = array<i64: 1, 256>}, {pipeline_mode = #tpu.pipeline_mode<synchronous>, transform_indices = @transform_4, window_bounds = array<i64: 256, 32>}, {pipeline_mode = #tpu.pipeline_mode<synchronous>, transform_indices = @transform_5, window_bounds = array<i64: 1, 32>}, {transform_indices = @transform_6, window_bounds = array<i64: 1, 1, 32>}, {transform_indices = @transform_7, window_bounds = array<i64: 1, 1, 32>}, {transform_indices = @transform_8, window_bounds = array<i64: 1, 4, 32, 8>}, {transform_indices = @transform_9, window_bounds = array<i64: 1, 4, 32, 8>}, {transform_indices = @transform_10, window_bounds = array<i64: 1, 4, 32, 8>}, {transform_indices = @transform_11, window_bounds = array<i64: 1, 4, 8, 32>}, {transform_indices = @transform_12, window_bounds = array<i64: 1, 1, 32>}, {transform_indices = @transform_13, window_bounds = array<i64: 1, 1, 1>}, {transform_indices = @transform_14, window_bounds = array<i64: 1, 1, 32>}, {transform_indices = @transform_15, window_bounds = array<i64: 1, 1, 32>}, {transform_indices = @transform_16, window_bounds = array<i64: 1, 32, 64>}, {transform_indices = @transform_17, window_bounds = array<i64: 1, 1, 64>}, {transform_indices = @transform_18, window_bounds = array<i64: 1, 64, 32>}, {transform_indices = @transform_19, window_bounds = array<i64: 1, 1, 32>}, {pipeline_mode = #tpu.pipeline_mode<synchronous>, transform_indices = @transform_20, window_bounds = array<i64: 1, 32>}, {pipeline_mode = #tpu.pipeline_mode<synchronous>, transform_indices = @transform_21, window_bounds = array<i64: 1, 32>}, {pipeline_mode = #tpu.pipeline_mode<synchronous>, transform_indices = @transform_22, window_bounds = array<i64: 32, 128>}, {pipeline_mode = #tpu.pipeline_mode<synchronous>, transform_indices = @transform_23, window_bounds = array<i64: 1, 128>}, {transform_indices = @transform_24, window_bounds = array<i64: 1, 1, 128>}]} {
    %c0_i32 = arith.constant 0 : i32
    %0 = arith.cmpi eq, %arg1, %c0_i32 : i32
    %1 = arith.extui %0 : i1 to i32
    %c0_i32_0 = arith.constant 0 : i32
    %2 = arith.cmpi ne, %1, %c0_i32_0 : i32
    scf.if %2 {
      %c0_87 = arith.constant 0 : index
      %c0_88 = arith.constant 0 : index
      %c0_89 = arith.constant 0 : index
      %172 = vector.load %arg2[%c0_87, %c0_88, %c0_89] : memref<1x24x256xf32, #tpu.memory_space<vmem>>, vector<1x24x256xf32>
      %173 = vector.shape_cast %172 : vector<1x24x256xf32> to vector<24x256xf32>
      %174 = tpu.iota {dimensions = array<i32: 1>} : vector<24x256xi32>
      %cst_90 = arith.constant dense<0.000000e+00> : vector<24xf32>
      %175 = vector.multi_reduction <add>, %173, %cst_90 [1] : vector<24x256xf32> to vector<24xf32>
      %176 = vector.shape_cast %175 : vector<24xf32> to vector<24x1xf32>
      %cst_91 = arith.constant 0.00416666688 : f32
      %177 = vector.broadcast %cst_91 : f32 to vector<24x1xf32>
      %178 = arith.mulf %176, %177 : vector<24x1xf32>
      %c240_i32 = arith.constant 240 : i32
      %179 = vector.broadcast %c240_i32 : i32 to vector<24x256xi32>
      %180 = arith.cmpi slt, %174, %179 : vector<24x256xi32>
      %181 = vector.broadcast %178 : vector<24x1xf32> to vector<24x256xf32>
      %182 = arith.subf %173, %181 : vector<24x256xf32>
      %cst_92 = arith.constant 0.000000e+00 : f32
      %183 = vector.broadcast %cst_92 : f32 to vector<24x256xf32>
      %184 = arith.select %180, %182, %183 : vector<24x256xi1>, vector<24x256xf32>
      %185 = arith.mulf %184, %184 : vector<24x256xf32>
      %cst_93 = arith.constant dense<0.000000e+00> : vector<24xf32>
      %186 = vector.multi_reduction <add>, %185, %cst_93 [1] : vector<24x256xf32> to vector<24xf32>
      %187 = vector.shape_cast %186 : vector<24xf32> to vector<24x1xf32>
      %cst_94 = arith.constant 0.00416666688 : f32
      %188 = vector.broadcast %cst_94 : f32 to vector<24x1xf32>
      %189 = arith.mulf %187, %188 : vector<24x1xf32>
      %cst_95 = arith.constant 9.99999974E-6 : f32
      %190 = vector.broadcast %cst_95 : f32 to vector<24x1xf32>
      %191 = arith.addf %189, %190 : vector<24x1xf32>
      %192 = math.rsqrt %191 : vector<24x1xf32>
      %193 = vector.broadcast %192 : vector<24x1xf32> to vector<24x256xf32>
      %194 = arith.mulf %184, %193 : vector<24x256xf32>
      %c0_96 = arith.constant 0 : index
      %c0_97 = arith.constant 0 : index
      %195 = vector.load %arg4[%c0_96, %c0_97] : memref<1x256xf32, #tpu.memory_space<vmem>>, vector<1x256xf32>
      %196 = vector.broadcast %195 : vector<1x256xf32> to vector<24x256xf32>
      %197 = arith.mulf %194, %196 : vector<24x256xf32>
      %c0_98 = arith.constant 0 : index
      %c0_99 = arith.constant 0 : index
      %198 = vector.load %arg5[%c0_98, %c0_99] : memref<1x256xf32, #tpu.memory_space<vmem>>, vector<1x256xf32>
      %199 = vector.broadcast %198 : vector<1x256xf32> to vector<24x256xf32>
      %200 = arith.addf %197, %199 : vector<24x256xf32>
      %201 = arith.truncf %200 : vector<24x256xf32> to vector<24x256xbf16>
      %c0_100 = arith.constant 0 : index
      %c0_101 = arith.constant 0 : index
      %202 = vector.load %arg6[%c0_100, %c0_101] : memref<256x32xbf16, #tpu.memory_space<vmem>>, vector<256x32xbf16>
      %cst_102 = arith.constant dense<0.000000e+00> : vector<24x32xf32>
      %203 = tpu.matmul %201, %202, %cst_102 {dimension_numbers = #tpu.dot_dimension_numbers<[1], [0], [0], [1], [0, 0, 1, 1], [], []>} : vector<24x256xbf16>, vector<256x32xbf16>, vector<24x32xf32> -> vector<24x32xf32>
      %c0_103 = arith.constant 0 : index
      %c0_104 = arith.constant 0 : index
      %204 = vector.load %arg7[%c0_103, %c0_104] : memref<1x32xf32, #tpu.memory_space<vmem>>, vector<1x32xf32>
      %205 = vector.broadcast %204 : vector<1x32xf32> to vector<24x32xf32>
      %206 = arith.addf %203, %205 : vector<24x32xf32>
      %207 = tpu.iota {dimensions = array<i32: 0>} : vector<24x1xi32>
      %c1_i32_105 = arith.constant 1 : i32
      %208 = vector.broadcast %c1_i32_105 : i32 to vector<24x1xi32>
      %209 = arith.cmpi sge, %207, %208 : vector<24x1xi32>
      %c17_i32_106 = arith.constant 17 : i32
      %210 = vector.broadcast %c17_i32_106 : i32 to vector<24x1xi32>
      %211 = arith.cmpi slt, %207, %210 : vector<24x1xi32>
      %212 = arith.andi %209, %211 : vector<24x1xi1>
      %cst_107 = arith.constant 0.000000e+00 : f32
      %213 = vector.shape_cast %212 : vector<24x1xi1> to vector<24x1xi1>
      %214 = vector.broadcast %213 : vector<24x1xi1> to vector<24x32xi1>
      %215 = vector.broadcast %cst_107 : f32 to vector<24x32xf32>
      %216 = arith.select %214, %206, %215 : vector<24x32xi1>, vector<24x32xf32>
      %c0_108 = arith.constant 0 : index
      %c0_109 = arith.constant 0 : index
      %c0_110 = arith.constant 0 : index
      %217 = vector.load %arg3[%c0_108, %c0_109, %c0_110] : memref<1x24x32xf32, #tpu.memory_space<vmem>>, vector<1x24x32xf32>
      %218 = vector.shape_cast %217 : vector<1x24x32xf32> to vector<24x32xf32>
      %219 = arith.addf %216, %218 : vector<24x32xf32>
      %c0_111 = arith.constant 0 : index
      %c0_112 = arith.constant 0 : index
      %220 = vector.load %arg27[%c0_111, %c0_112] : memref<24x32xf32, #tpu.memory_space<vmem>>, vector<24x32xf32>
      tpu.vector_store %arg27[%c0_111, %c0_112], %219 {strides = array<i32>} : memref<24x32xf32, #tpu.memory_space<vmem>>, vector<24x32xf32>,
    } else {
    }
    %c0 = arith.constant 0 : index
    %c0_1 = arith.constant 0 : index
    %3 = vector.load %arg27[%c0, %c0_1] : memref<24x32xf32, #tpu.memory_space<vmem>>, vector<24x32xf32>
    %c0_2 = arith.constant 0 : index
    %c0_3 = arith.constant 0 : index
    %c0_4 = arith.constant 0 : index
    %4 = vector.load %arg8[%c0_2, %c0_3, %c0_4] : memref<1x1x32xf32, #tpu.memory_space<vmem>>, vector<1x1x32xf32>
    %5 = vector.shape_cast %4 : vector<1x1x32xf32> to vector<1x32xf32>
    %c0_5 = arith.constant 0 : index
    %c0_6 = arith.constant 0 : index
    %c0_7 = arith.constant 0 : index
    %6 = vector.load %arg9[%c0_5, %c0_6, %c0_7] : memref<1x1x32xf32, #tpu.memory_space<vmem>>, vector<1x1x32xf32>
    %7 = vector.shape_cast %6 : vector<1x1x32xf32> to vector<1x32xf32>
    %cst = arith.constant dense<0.000000e+00> : vector<24xf32>
    %8 = vector.multi_reduction <add>, %3, %cst [1] : vector<24x32xf32> to vector<24xf32>
    %9 = vector.shape_cast %8 : vector<24xf32> to vector<24x1xf32>
    %cst_8 = arith.constant 3.200000e+01 : f32
    %10 = vector.broadcast %cst_8 : f32 to vector<24x1xf32>
    %11 = arith.divf %9, %10 : vector<24x1xf32>
    %12 = vector.broadcast %11 : vector<24x1xf32> to vector<24x32xf32>
    %13 = arith.subf %3, %12 : vector<24x32xf32>
    %14 = arith.mulf %13, %13 : vector<24x32xf32>
    %cst_9 = arith.constant dense<0.000000e+00> : vector<24xf32>
    %15 = vector.multi_reduction <add>, %14, %cst_9 [1] : vector<24x32xf32> to vector<24xf32>
    %16 = vector.shape_cast %15 : vector<24xf32> to vector<24x1xf32>
    %cst_10 = arith.constant 3.200000e+01 : f32
    %17 = vector.broadcast %cst_10 : f32 to vector<24x1xf32>
    %18 = arith.divf %16, %17 : vector<24x1xf32>
    %19 = vector.broadcast %11 : vector<24x1xf32> to vector<24x32xf32>
    %20 = arith.subf %3, %19 : vector<24x32xf32>
    %cst_11 = arith.constant 9.99999974E-6 : f32
    %21 = vector.broadcast %cst_11 : f32 to vector<24x1xf32>
    %22 = arith.addf %18, %21 : vector<24x1xf32>
    %23 = math.rsqrt %22 : vector<24x1xf32>
    %24 = vector.broadcast %23 : vector<24x1xf32> to vector<24x32xf32>
    %25 = arith.mulf %20, %24 : vector<24x32xf32>
    %26 = vector.broadcast %5 : vector<1x32xf32> to vector<24x32xf32>
    %27 = arith.mulf %25, %26 : vector<24x32xf32>
    %28 = vector.broadcast %7 : vector<1x32xf32> to vector<24x32xf32>
    %29 = arith.addf %27, %28 : vector<24x32xf32>
    %30 = vector.shape_cast %29 : vector<24x32xf32> to vector<1x24x32xf32>
    %31 = vector.shape_cast %30 : vector<1x24x32xf32> to vector<1x24x32xf32>
    %32 = vector.broadcast %31 : vector<1x24x32xf32> to vector<4x24x32xf32>
    %33 = arith.truncf %32 : vector<4x24x32xf32> to vector<4x24x32xbf16>
    %c0_12 = arith.constant 0 : index
    %c0_13 = arith.constant 0 : index
    %c0_14 = arith.constant 0 : index
    %c0_15 = arith.constant 0 : index
    %34 = vector.load %arg10[%c0_12, %c0_13, %c0_14, %c0_15] : memref<1x4x32x8xbf16, #tpu.memory_space<vmem>>, vector<1x4x32x8xbf16>
    %35 = vector.shape_cast %34 : vector<1x4x32x8xbf16> to vector<4x32x8xbf16>
    "tpu.trace_start"() <{level = 10 : i32, message = "hnd,hdk->hnk"}> : () -> ()
    %cst_16 = arith.constant dense<0.000000e+00> : vector<4x24x8xf32>
    %36 = tpu.matmul %33, %35, %cst_16 {dimension_numbers = #tpu.dot_dimension_numbers<[2], [1], [1], [2], [0, 0, 0, 1, 1, 2], [0], [0]>} : vector<4x24x32xbf16>, vector<4x32x8xbf16>, vector<4x24x8xf32> -> vector<4x24x8xf32>
    "tpu.trace_stop"() : () -> ()
    %c0_17 = arith.constant 0 : index
    %c0_18 = arith.constant 0 : index
    %c0_19 = arith.constant 0 : index
    %c0_20 = arith.constant 0 : index
    %37 = vector.load %arg11[%c0_17, %c0_18, %c0_19, %c0_20] : memref<1x4x32x8xbf16, #tpu.memory_space<vmem>>, vector<1x4x32x8xbf16>
    %38 = vector.shape_cast %37 : vector<1x4x32x8xbf16> to vector<4x32x8xbf16>
    "tpu.trace_start"() <{level = 10 : i32, message = "hnd,hdk->hnk"}> : () -> ()
    %cst_21 = arith.constant dense<0.000000e+00> : vector<4x24x8xf32>
    %39 = tpu.matmul %33, %38, %cst_21 {dimension_numbers = #tpu.dot_dimension_numbers<[2], [1], [1], [2], [0, 0, 0, 1, 1, 2], [0], [0]>} : vector<4x24x32xbf16>, vector<4x32x8xbf16>, vector<4x24x8xf32> -> vector<4x24x8xf32>
    "tpu.trace_stop"() : () -> ()
    %c0_22 = arith.constant 0 : index
    %c0_23 = arith.constant 0 : index
    %c0_24 = arith.constant 0 : index
    %c0_25 = arith.constant 0 : index
    %40 = vector.load %arg12[%c0_22, %c0_23, %c0_24, %c0_25] : memref<1x4x32x8xbf16, #tpu.memory_space<vmem>>, vector<1x4x32x8xbf16>
    %41 = vector.shape_cast %40 : vector<1x4x32x8xbf16> to vector<4x32x8xbf16>
    "tpu.trace_start"() <{level = 10 : i32, message = "hnd,hdk->hnk"}> : () -> ()
    %cst_26 = arith.constant dense<0.000000e+00> : vector<4x24x8xf32>
    %42 = tpu.matmul %33, %41, %cst_26 {dimension_numbers = #tpu.dot_dimension_numbers<[2], [1], [1], [2], [0, 0, 0, 1, 1, 2], [0], [0]>} : vector<4x24x32xbf16>, vector<4x32x8xbf16>, vector<4x24x8xf32> -> vector<4x24x8xf32>
    "tpu.trace_stop"() : () -> ()
    %43 = arith.truncf %36 : vector<4x24x8xf32> to vector<4x24x8xbf16>
    %44 = arith.truncf %39 : vector<4x24x8xf32> to vector<4x24x8xbf16>
    "tpu.trace_start"() <{level = 10 : i32, message = "hnd,hmd->hnm"}> : () -> ()
    %cst_27 = arith.constant dense<0.000000e+00> : vector<4x24x24xf32>
    %45 = tpu.matmul %43, %44, %cst_27 {dimension_numbers = #tpu.dot_dimension_numbers<[2], [2], [1], [1], [0, 0, 0, 1, 1, 1], [0], [0]>} : vector<4x24x8xbf16>, vector<4x24x8xbf16>, vector<4x24x24xf32> -> vector<4x24x24xf32>
    "tpu.trace_stop"() : () -> ()
    %c0_28 = arith.constant 0 : index
    %c0_29 = arith.constant 0 : index
    %c0_30 = arith.constant 0 : index
    %46 = vector.load %arg15[%c0_28, %c0_29, %c0_30] : memref<1x1x1xf32, #tpu.memory_space<vmem>>, vector<1x1x1xf32>
    %47 = vector.shape_cast %46 : vector<1x1x1xf32> to vector<1x1xf32>
    %48 = vector.shape_cast %47 : vector<1x1xf32> to vector<1x1x1xf32>
    %49 = vector.broadcast %48 : vector<1x1x1xf32> to vector<4x24x24xf32>
    %50 = arith.mulf %45, %49 : vector<4x24x24xf32>
    %51 = tpu.iota {dimensions = array<i32: 0>} : vector<24x24xi32>
    %52 = tpu.iota {dimensions = array<i32: 1>} : vector<24x24xi32>
    %53 = arith.cmpi eq, %51, %52 : vector<24x24xi32>
    %c17_i32 = arith.constant 17 : i32
    %54 = vector.broadcast %c17_i32 : i32 to vector<24x24xi32>
    %55 = arith.cmpi sge, %52, %54 : vector<24x24xi32>
    %56 = arith.ori %53, %55 : vector<24x24xi1>
    %57 = vector.shape_cast %56 : vector<24x24xi1> to vector<1x24x24xi1>
    %cst_31 = arith.constant -1.000000e+30 : f32
    %58 = vector.shape_cast %57 : vector<1x24x24xi1> to vector<1x24x24xi1>
    %59 = vector.broadcast %58 : vector<1x24x24xi1> to vector<4x24x24xi1>
    %60 = vector.broadcast %cst_31 : f32 to vector<4x24x24xf32>
    %61 = arith.select %59, %60, %50 : vector<4x24x24xi1>, vector<4x24x24xf32>
    %cst_32 = arith.constant dense<0xFF800000> : vector<4x24xf32>
    %62 = vector.multi_reduction <maximumf>, %61, %cst_32 [2] : vector<4x24x24xf32> to vector<4x24xf32>
    %63 = vector.shape_cast %62 : vector<4x24xf32> to vector<4x24x1xf32>
    %64 = vector.broadcast %63 : vector<4x24x1xf32> to vector<4x24x24xf32>
    %65 = arith.subf %61, %64 : vector<4x24x24xf32>
    %66 = math.exp %65 : vector<4x24x24xf32>
    %cst_33 = arith.constant dense<0.000000e+00> : vector<4x24xf32>
    %67 = vector.multi_reduction <add>, %66, %cst_33 [2] : vector<4x24x24xf32> to vector<4x24xf32>
    %68 = vector.shape_cast %67 : vector<4x24xf32> to vector<4x24x1xf32>
    %69 = tpu.reciprocal %68 {approx = true} : vector<4x24x1xf32> -> vector<4x24x1xf32>
    %70 = vector.broadcast %69 : vector<4x24x1xf32> to vector<4x24x24xf32>
    %71 = arith.mulf %66, %70 : vector<4x24x24xf32>
    %72 = arith.truncf %71 : vector<4x24x24xf32> to vector<4x24x24xbf16>
    %73 = arith.truncf %42 : vector<4x24x8xf32> to vector<4x24x8xbf16>
    "tpu.trace_start"() <{level = 10 : i32, message = "hnm,hmd->hnd"}> : () -> ()
    %cst_34 = arith.constant dense<0.000000e+00> : vector<4x24x8xf32>
    %74 = tpu.matmul %72, %73, %cst_34 {dimension_numbers = #tpu.dot_dimension_numbers<[2], [1], [1], [2], [0, 0, 0, 1, 1, 2], [0], [0]>} : vector<4x24x24xbf16>, vector<4x24x8xbf16>, vector<4x24x8xf32> -> vector<4x24x8xf32>
    "tpu.trace_stop"() : () -> ()
    %75 = arith.truncf %74 : vector<4x24x8xf32> to vector<4x24x8xbf16>
    %c0_35 = arith.constant 0 : index
    %c0_36 = arith.constant 0 : index
    %c0_37 = arith.constant 0 : index
    %c0_38 = arith.constant 0 : index
    %76 = vector.load %arg13[%c0_35, %c0_36, %c0_37, %c0_38] : memref<1x4x8x32xbf16, #tpu.memory_space<vmem>>, vector<1x4x8x32xbf16>
    %77 = vector.shape_cast %76 : vector<1x4x8x32xbf16> to vector<4x8x32xbf16>
    "tpu.trace_start"() <{level = 10 : i32, message = "hnd,hdo->hno"}> : () -> ()
    %cst_39 = arith.constant dense<0.000000e+00> : vector<4x24x32xf32>
    %78 = tpu.matmul %75, %77, %cst_39 {dimension_numbers = #tpu.dot_dimension_numbers<[2], [1], [1], [2], [0, 0, 0, 1, 1, 2], [0], [0]>} : vector<4x24x8xbf16>, vector<4x8x32xbf16>, vector<4x24x32xf32> -> vector<4x24x32xf32>
    "tpu.trace_stop"() : () -> ()
    %cst_40 = arith.constant dense<0.000000e+00> : vector<24x32xf32>
    %79 = vector.multi_reduction <add>, %78, %cst_40 [0] : vector<4x24x32xf32> to vector<24x32xf32>
    %c0_41 = arith.constant 0 : index
    %c0_42 = arith.constant 0 : index
    %c0_43 = arith.constant 0 : index
    %80 = vector.load %arg14[%c0_41, %c0_42, %c0_43] : memref<1x1x32xf32, #tpu.memory_space<vmem>>, vector<1x1x32xf32>
    %81 = vector.shape_cast %80 : vector<1x1x32xf32> to vector<1x32xf32>
    %82 = vector.broadcast %81 : vector<1x32xf32> to vector<24x32xf32>
    %83 = arith.addf %79, %82 : vector<24x32xf32>
    %84 = arith.addf %3, %83 : vector<24x32xf32>
    %c0_44 = arith.constant 0 : index
    %c0_45 = arith.constant 0 : index
    %c0_46 = arith.constant 0 : index
    %85 = vector.load %arg16[%c0_44, %c0_45, %c0_46] : memref<1x1x32xf32, #tpu.memory_space<vmem>>, vector<1x1x32xf32>
    %86 = vector.shape_cast %85 : vector<1x1x32xf32> to vector<1x32xf32>
    %c0_47 = arith.constant 0 : index
    %c0_48 = arith.constant 0 : index
    %c0_49 = arith.constant 0 : index
    %87 = vector.load %arg17[%c0_47, %c0_48, %c0_49] : memref<1x1x32xf32, #tpu.memory_space<vmem>>, vector<1x1x32xf32>
    %88 = vector.shape_cast %87 : vector<1x1x32xf32> to vector<1x32xf32>
    %cst_50 = arith.constant dense<0.000000e+00> : vector<24xf32>
    %89 = vector.multi_reduction <add>, %84, %cst_50 [1] : vector<24x32xf32> to vector<24xf32>
    %90 = vector.shape_cast %89 : vector<24xf32> to vector<24x1xf32>
    %cst_51 = arith.constant 3.200000e+01 : f32
    %91 = vector.broadcast %cst_51 : f32 to vector<24x1xf32>
    %92 = arith.divf %90, %91 : vector<24x1xf32>
    %93 = vector.broadcast %92 : vector<24x1xf32> to vector<24x32xf32>
    %94 = arith.subf %84, %93 : vector<24x32xf32>
    %95 = arith.mulf %94, %94 : vector<24x32xf32>
    %cst_52 = arith.constant dense<0.000000e+00> : vector<24xf32>
    %96 = vector.multi_reduction <add>, %95, %cst_52 [1] : vector<24x32xf32> to vector<24xf32>
    %97 = vector.shape_cast %96 : vector<24xf32> to vector<24x1xf32>
    %cst_53 = arith.constant 3.200000e+01 : f32
    %98 = vector.broadcast %cst_53 : f32 to vector<24x1xf32>
    %99 = arith.divf %97, %98 : vector<24x1xf32>
    %100 = vector.broadcast %92 : vector<24x1xf32> to vector<24x32xf32>
    %101 = arith.subf %84, %100 : vector<24x32xf32>
    %cst_54 = arith.constant 9.99999974E-6 : f32
    %102 = vector.broadcast %cst_54 : f32 to vector<24x1xf32>
    %103 = arith.addf %99, %102 : vector<24x1xf32>
    %104 = math.rsqrt %103 : vector<24x1xf32>
    %105 = vector.broadcast %104 : vector<24x1xf32> to vector<24x32xf32>
    %106 = arith.mulf %101, %105 : vector<24x32xf32>
    %107 = vector.broadcast %86 : vector<1x32xf32> to vector<24x32xf32>
    %108 = arith.mulf %106, %107 : vector<24x32xf32>
    %109 = vector.broadcast %88 : vector<1x32xf32> to vector<24x32xf32>
    %110 = arith.addf %108, %109 : vector<24x32xf32>
    %111 = arith.truncf %110 : vector<24x32xf32> to vector<24x32xbf16>
    %c0_55 = arith.constant 0 : index
    %c0_56 = arith.constant 0 : index
    %c0_57 = arith.constant 0 : index
    %112 = vector.load %arg18[%c0_55, %c0_56, %c0_57] : memref<1x32x64xbf16, #tpu.memory_space<vmem>>, vector<1x32x64xbf16>
    %113 = vector.shape_cast %112 : vector<1x32x64xbf16> to vector<32x64xbf16>
    %cst_58 = arith.constant dense<0.000000e+00> : vector<24x64xf32>
    %114 = tpu.matmul %111, %113, %cst_58 {dimension_numbers = #tpu.dot_dimension_numbers<[1], [0], [0], [1], [0, 0, 1, 1], [], []>} : vector<24x32xbf16>, vector<32x64xbf16>, vector<24x64xf32> -> vector<24x64xf32>
    %c0_59 = arith.constant 0 : index
    %c0_60 = arith.constant 0 : index
    %c0_61 = arith.constant 0 : index
    %115 = vector.load %arg19[%c0_59, %c0_60, %c0_61] : memref<1x1x64xf32, #tpu.memory_space<vmem>>, vector<1x1x64xf32>
    %116 = vector.shape_cast %115 : vector<1x1x64xf32> to vector<1x64xf32>
    %117 = vector.broadcast %116 : vector<1x64xf32> to vector<24x64xf32>
    %118 = arith.addf %114, %117 : vector<24x64xf32>
    %cst_62 = arith.constant 5.000000e-01 : f32
    %119 = vector.broadcast %cst_62 : f32 to vector<24x64xf32>
    %120 = arith.mulf %119, %118 : vector<24x64xf32>
    %cst_63 = arith.constant 0.707106769 : f32
    %121 = vector.broadcast %cst_63 : f32 to vector<24x64xf32>
    %122 = arith.mulf %118, %121 : vector<24x64xf32>
    %123 = math.absf %122 : vector<24x64xf32>
    %cst_64 = arith.constant 0.327591091 : f32
    %124 = vector.broadcast %cst_64 : f32 to vector<24x64xf32>
    %125 = arith.mulf %124, %123 : vector<24x64xf32>
    %cst_65 = arith.constant 1.000000e+00 : f32
    %126 = vector.broadcast %cst_65 : f32 to vector<24x64xf32>
    %127 = arith.addf %126, %125 : vector<24x64xf32>
    %cst_66 = arith.constant 1.000000e+00 : f32
    %128 = vector.broadcast %cst_66 : f32 to vector<24x64xf32>
    %129 = arith.divf %128, %127 : vector<24x64xf32>
    %cst_67 = arith.constant 1.06140542 : f32
    %130 = vector.broadcast %cst_67 : f32 to vector<24x64xf32>
    %131 = arith.mulf %130, %129 : vector<24x64xf32>
    %cst_68 = arith.constant -1.45315206 : f32
    %132 = vector.broadcast %cst_68 : f32 to vector<24x64xf32>
    %133 = arith.addf %131, %132 : vector<24x64xf32>
    %134 = arith.mulf %133, %129 : vector<24x64xf32>
    %cst_69 = arith.constant 1.42141378 : f32
    %135 = vector.broadcast %cst_69 : f32 to vector<24x64xf32>
    %136 = arith.addf %134, %135 : vector<24x64xf32>
    %137 = arith.mulf %136, %129 : vector<24x64xf32>
    %cst_70 = arith.constant -0.284496725 : f32
    %138 = vector.broadcast %cst_70 : f32 to vector<24x64xf32>
    %139 = arith.addf %137, %138 : vector<24x64xf32>
    %140 = arith.mulf %139, %129 : vector<24x64xf32>
    %cst_71 = arith.constant 0.254829586 : f32
    %141 = vector.broadcast %cst_71 : f32 to vector<24x64xf32>
    %142 = arith.addf %140, %141 : vector<24x64xf32>
    %143 = arith.mulf %142, %129 : vector<24x64xf32>
    %cst_72 = arith.constant 0.000000e+00 : f32
    %144 = vector.broadcast %cst_72 : f32 to vector<24x64xf32>
    %145 = arith.subf %144, %123 : vector<24x64xf32>
    %146 = arith.mulf %145, %123 : vector<24x64xf32>
    %147 = math.exp %146 : vector<24x64xf32>
    %148 = arith.mulf %143, %147 : vector<24x64xf32>
    %cst_73 = arith.constant 1.000000e+00 : f32
    %149 = vector.broadcast %cst_73 : f32 to vector<24x64xf32>
    %150 = arith.subf %149, %148 : vector<24x64xf32>
    %cst_74 = arith.constant 0.000000e+00 : f32
    %151 = vector.broadcast %cst_74 : f32 to vector<24x64xf32>
    %152 = arith.cmpf oge, %122, %151 : vector<24x64xf32>
    %cst_75 = arith.constant 0.000000e+00 : f32
    %153 = vector.broadcast %cst_75 : f32 to vector<24x64xf32>
    %154 = arith.subf %153, %150 : vector<24x64xf32>
    %155 = arith.select %152, %150, %154 : vector<24x64xi1>, vector<24x64xf32>
    %cst_76 = arith.constant 1.000000e+00 : f32
    %156 = vector.broadcast %cst_76 : f32 to vector<24x64xf32>
    %157 = arith.addf %156, %155 : vector<24x64xf32>
    %158 = arith.mulf %120, %157 : vector<24x64xf32>
    %159 = arith.truncf %158 : vector<24x64xf32> to vector<24x64xbf16>
    %c0_77 = arith.constant 0 : index
    %c0_78 = arith.constant 0 : index
    %c0_79 = arith.constant 0 : index
    %160 = vector.load %arg20[%c0_77, %c0_78, %c0_79] : memref<1x64x32xbf16, #tpu.memory_space<vmem>>, vector<1x64x32xbf16>
    %161 = vector.shape_cast %160 : vector<1x64x32xbf16> to vector<64x32xbf16>
    %cst_80 = arith.constant dense<0.000000e+00> : vector<24x32xf32>
    %162 = tpu.matmul %159, %161, %cst_80 {dimension_numbers = #tpu.dot_dimension_numbers<[1], [0], [0], [1], [0, 0, 1, 1], [], []>} : vector<24x64xbf16>, vector<64x32xbf16>, vector<24x32xf32> -> vector<24x32xf32>
    %c0_81 = arith.constant 0 : index
    %c0_82 = arith.constant 0 : index
    %c0_83 = arith.constant 0 : index
    %163 = vector.load %arg21[%c0_81, %c0_82, %c0_83] : memref<1x1x32xf32, #tpu.memory_space<vmem>>, vector<1x1x32xf32>
    %164 = vector.shape_cast %163 : vector<1x1x32xf32> to vector<1x32xf32>
    %165 = vector.broadcast %164 : vector<1x32xf32> to vector<24x32xf32>
    %166 = arith.addf %162, %165 : vector<24x32xf32>
    %167 = arith.addf %84, %166 : vector<24x32xf32>
    %c0_84 = arith.constant 0 : index
    %c0_85 = arith.constant 0 : index
    %168 = vector.load %arg27[%c0_84, %c0_85] : memref<24x32xf32, #tpu.memory_space<vmem>>, vector<24x32xf32>
    tpu.vector_store %arg27[%c0_84, %c0_85], %167 {strides = array<i32>} : memref<24x32xf32, #tpu.memory_space<vmem>>, vector<24x32xf32>,
    %c1_i32 = arith.constant 1 : i32
    %169 = arith.cmpi eq, %arg1, %c1_i32 : i32
    %170 = arith.extui %169 : i1 to i32
    %c0_i32_86 = arith.constant 0 : i32
    %171 = arith.cmpi ne, %170, %c0_i32_86 : i32
    scf.if %171 {
      %172 = vector.extract_strided_slice %167 {offsets = [0, 0], sizes = [1, 32], strides = [1, 1]} : vector<24x32xf32> to vector<1x32xf32>
      %c0_87 = arith.constant 0 : index
      %c0_88 = arith.constant 0 : index
      %173 = vector.load %arg22[%c0_87, %c0_88] : memref<1x32xf32, #tpu.memory_space<vmem>>, vector<1x32xf32>
      %c0_89 = arith.constant 0 : index
      %c0_90 = arith.constant 0 : index
      %174 = vector.load %arg23[%c0_89, %c0_90] : memref<1x32xf32, #tpu.memory_space<vmem>>, vector<1x32xf32>
      %cst_91 = arith.constant dense<0.000000e+00> : vector<1xf32>
      %175 = vector.multi_reduction <add>, %172, %cst_91 [1] : vector<1x32xf32> to vector<1xf32>
      %176 = vector.shape_cast %175 : vector<1xf32> to vector<1x1xf32>
      %cst_92 = arith.constant 3.200000e+01 : f32
      %177 = vector.broadcast %cst_92 : f32 to vector<1x1xf32>
      %178 = arith.divf %176, %177 : vector<1x1xf32>
      %179 = vector.broadcast %178 : vector<1x1xf32> to vector<1x32xf32>
      %180 = arith.subf %172, %179 : vector<1x32xf32>
      %181 = arith.mulf %180, %180 : vector<1x32xf32>
      %cst_93 = arith.constant dense<0.000000e+00> : vector<1xf32>
      %182 = vector.multi_reduction <add>, %181, %cst_93 [1] : vector<1x32xf32> to vector<1xf32>
      %183 = vector.shape_cast %182 : vector<1xf32> to vector<1x1xf32>
      %cst_94 = arith.constant 3.200000e+01 : f32
      %184 = vector.broadcast %cst_94 : f32 to vector<1x1xf32>
      %185 = arith.divf %183, %184 : vector<1x1xf32>
      %186 = vector.broadcast %178 : vector<1x1xf32> to vector<1x32xf32>
      %187 = arith.subf %172, %186 : vector<1x32xf32>
      %cst_95 = arith.constant 9.99999974E-6 : f32
      %188 = vector.broadcast %cst_95 : f32 to vector<1x1xf32>
      %189 = arith.addf %185, %188 : vector<1x1xf32>
      %190 = math.rsqrt %189 : vector<1x1xf32>
      %191 = vector.broadcast %190 : vector<1x1xf32> to vector<1x32xf32>
      %192 = arith.mulf %187, %191 : vector<1x32xf32>
      %193 = arith.mulf %192, %173 : vector<1x32xf32>
      %194 = arith.addf %193, %174 : vector<1x32xf32>
      %195 = arith.truncf %194 : vector<1x32xf32> to vector<1x32xbf16>
      %c0_96 = arith.constant 0 : index
      %c0_97 = arith.constant 0 : index
      %196 = vector.load %arg24[%c0_96, %c0_97] : memref<32x128xbf16, #tpu.memory_space<vmem>>, vector<32x128xbf16>
      %cst_98 = arith.constant dense<0.000000e+00> : vector<1x128xf32>
      %197 = tpu.matmul %195, %196, %cst_98 {dimension_numbers = #tpu.dot_dimension_numbers<[1], [0], [0], [1], [0, 0, 1, 1], [], []>} : vector<1x32xbf16>, vector<32x128xbf16>, vector<1x128xf32> -> vector<1x128xf32>
      %c0_99 = arith.constant 0 : index
      %c0_100 = arith.constant 0 : index
      %198 = vector.load %arg25[%c0_99, %c0_100] : memref<1x128xf32, #tpu.memory_space<vmem>>, vector<1x128xf32>
      %199 = arith.addf %197, %198 : vector<1x128xf32>
      %c0_101 = arith.constant 0 : index
      %c0_102 = arith.constant 0 : index
      %c0_103 = arith.constant 0 : index
      %200 = vector.load %arg26[%c0_101, %c0_102, %c0_103] : memref<1x1x128xf32, #tpu.memory_space<vmem>>, vector<1x1x128xf32>
      %201 = vector.shape_cast %200 : vector<1x1x128xf32> to vector<1x128xf32>
      %202 = vector.shape_cast %199 : vector<1x128xf32> to vector<1x1x128xf32>
      tpu.vector_store %arg26[%c0_101, %c0_102, %c0_103], %202 {strides = array<i32>} : memref<1x1x128xf32, #tpu.memory_space<vmem>>, vector<1x1x128xf32>,
    } else {
    }
    return
  }
  func.func @transform_0(%arg0: i32, %arg1: i32) -> (i32, i32, i32) {
    %c0_i32 = arith.constant 0 : i32
    %c0_i32_0 = arith.constant 0 : i32
    %c0_i32_1 = arith.constant 0 : i32
    return %arg0, %c0_i32, %c0_i32_0 : i32, i32, i32
  }
  func.func @transform_1(%arg0: i32, %arg1: i32) -> (i32, i32, i32) {
    %c0_i32 = arith.constant 0 : i32
    %c0_i32_0 = arith.constant 0 : i32
    %c0_i32_1 = arith.constant 0 : i32
    %c0_i32_2 = arith.constant 0 : i32
    return %c0_i32, %c0_i32_0, %c0_i32_1 : i32, i32, i32
  }
  func.func @transform_2(%arg0: i32, %arg1: i32) -> (i32, i32) {
    %c0_i32 = arith.constant 0 : i32
    %c0_i32_0 = arith.constant 0 : i32
    %c0_i32_1 = arith.constant 0 : i32
    return %c0_i32, %c0_i32_0 : i32, i32
  }
  func.func @transform_3(%arg0: i32, %arg1: i32) -> (i32, i32) {
    %c0_i32 = arith.constant 0 : i32
    %c0_i32_0 = arith.constant 0 : i32
    %c0_i32_1 = arith.constant 0 : i32
    return %c0_i32, %c0_i32_0 : i32, i32
  }
  func.func @transform_4(%arg0: i32, %arg1: i32) -> (i32, i32) {
    %c0_i32 = arith.constant 0 : i32
    %c0_i32_0 = arith.constant 0 : i32
    %c0_i32_1 = arith.constant 0 : i32
    return %c0_i32, %c0_i32_0 : i32, i32
  }
  func.func @transform_5(%arg0: i32, %arg1: i32) -> (i32, i32) {
    %c0_i32 = arith.constant 0 : i32
    %c0_i32_0 = arith.constant 0 : i32
    %c0_i32_1 = arith.constant 0 : i32
    return %c0_i32, %c0_i32_0 : i32, i32
  }
  func.func @transform_6(%arg0: i32, %arg1: i32) -> (i32, i32, i32) {
    %c0_i32 = arith.constant 0 : i32
    %c0_i32_0 = arith.constant 0 : i32
    %c0_i32_1 = arith.constant 0 : i32
    return %arg1, %c0_i32, %c0_i32_0 : i32, i32, i32
  }
  func.func @transform_7(%arg0: i32, %arg1: i32) -> (i32, i32, i32) {
    %c0_i32 = arith.constant 0 : i32
    %c0_i32_0 = arith.constant 0 : i32
    %c0_i32_1 = arith.constant 0 : i32
    return %arg1, %c0_i32, %c0_i32_0 : i32, i32, i32
  }
  func.func @transform_8(%arg0: i32, %arg1: i32) -> (i32, i32, i32, i32) {
    %c0_i32 = arith.constant 0 : i32
    %c0_i32_0 = arith.constant 0 : i32
    %c0_i32_1 = arith.constant 0 : i32
    %c0_i32_2 = arith.constant 0 : i32
    return %arg1, %c0_i32, %c0_i32_0, %c0_i32_1 : i32, i32, i32, i32
  }
  func.func @transform_9(%arg0: i32, %arg1: i32) -> (i32, i32, i32, i32) {
    %c0_i32 = arith.constant 0 : i32
    %c0_i32_0 = arith.constant 0 : i32
    %c0_i32_1 = arith.constant 0 : i32
    %c0_i32_2 = arith.constant 0 : i32
    return %arg1, %c0_i32, %c0_i32_0, %c0_i32_1 : i32, i32, i32, i32
  }
  func.func @transform_10(%arg0: i32, %arg1: i32) -> (i32, i32, i32, i32) {
    %c0_i32 = arith.constant 0 : i32
    %c0_i32_0 = arith.constant 0 : i32
    %c0_i32_1 = arith.constant 0 : i32
    %c0_i32_2 = arith.constant 0 : i32
    return %arg1, %c0_i32, %c0_i32_0, %c0_i32_1 : i32, i32, i32, i32
  }
  func.func @transform_11(%arg0: i32, %arg1: i32) -> (i32, i32, i32, i32) {
    %c0_i32 = arith.constant 0 : i32
    %c0_i32_0 = arith.constant 0 : i32
    %c0_i32_1 = arith.constant 0 : i32
    %c0_i32_2 = arith.constant 0 : i32
    return %arg1, %c0_i32, %c0_i32_0, %c0_i32_1 : i32, i32, i32, i32
  }
  func.func @transform_12(%arg0: i32, %arg1: i32) -> (i32, i32, i32) {
    %c0_i32 = arith.constant 0 : i32
    %c0_i32_0 = arith.constant 0 : i32
    %c0_i32_1 = arith.constant 0 : i32
    return %arg1, %c0_i32, %c0_i32_0 : i32, i32, i32
  }
  func.func @transform_13(%arg0: i32, %arg1: i32) -> (i32, i32, i32) {
    %c0_i32 = arith.constant 0 : i32
    %c0_i32_0 = arith.constant 0 : i32
    %c0_i32_1 = arith.constant 0 : i32
    return %arg1, %c0_i32, %c0_i32_0 : i32, i32, i32
  }
  func.func @transform_14(%arg0: i32, %arg1: i32) -> (i32, i32, i32) {
    %c0_i32 = arith.constant 0 : i32
    %c0_i32_0 = arith.constant 0 : i32
    %c0_i32_1 = arith.constant 0 : i32
    return %arg1, %c0_i32, %c0_i32_0 : i32, i32, i32
  }
  func.func @transform_15(%arg0: i32, %arg1: i32) -> (i32, i32, i32) {
    %c0_i32 = arith.constant 0 : i32
    %c0_i32_0 = arith.constant 0 : i32
    %c0_i32_1 = arith.constant 0 : i32
    return %arg1, %c0_i32, %c0_i32_0 : i32, i32, i32
  }
  func.func @transform_16(%arg0: i32, %arg1: i32) -> (i32, i32, i32) {
    %c0_i32 = arith.constant 0 : i32
    %c0_i32_0 = arith.constant 0 : i32
    %c0_i32_1 = arith.constant 0 : i32
    return %arg1, %c0_i32, %c0_i32_0 : i32, i32, i32
  }
  func.func @transform_17(%arg0: i32, %arg1: i32) -> (i32, i32, i32) {
    %c0_i32 = arith.constant 0 : i32
    %c0_i32_0 = arith.constant 0 : i32
    %c0_i32_1 = arith.constant 0 : i32
    return %arg1, %c0_i32, %c0_i32_0 : i32, i32, i32
  }
  func.func @transform_18(%arg0: i32, %arg1: i32) -> (i32, i32, i32) {
    %c0_i32 = arith.constant 0 : i32
    %c0_i32_0 = arith.constant 0 : i32
    %c0_i32_1 = arith.constant 0 : i32
    return %arg1, %c0_i32, %c0_i32_0 : i32, i32, i32
  }
  func.func @transform_19(%arg0: i32, %arg1: i32) -> (i32, i32, i32) {
    %c0_i32 = arith.constant 0 : i32
    %c0_i32_0 = arith.constant 0 : i32
    %c0_i32_1 = arith.constant 0 : i32
    return %arg1, %c0_i32, %c0_i32_0 : i32, i32, i32
  }
  func.func @transform_20(%arg0: i32, %arg1: i32) -> (i32, i32) {
    %c0_i32 = arith.constant 0 : i32
    %c0_i32_0 = arith.constant 0 : i32
    %c0_i32_1 = arith.constant 0 : i32
    return %c0_i32, %c0_i32_0 : i32, i32
  }
  func.func @transform_21(%arg0: i32, %arg1: i32) -> (i32, i32) {
    %c0_i32 = arith.constant 0 : i32
    %c0_i32_0 = arith.constant 0 : i32
    %c0_i32_1 = arith.constant 0 : i32
    return %c0_i32, %c0_i32_0 : i32, i32
  }
  func.func @transform_22(%arg0: i32, %arg1: i32) -> (i32, i32) {
    %c0_i32 = arith.constant 0 : i32
    %c0_i32_0 = arith.constant 0 : i32
    %c0_i32_1 = arith.constant 0 : i32
    return %c0_i32, %c0_i32_0 : i32, i32
  }
  func.func @transform_23(%arg0: i32, %arg1: i32) -> (i32, i32) {
    %c0_i32 = arith.constant 0 : i32
    %c0_i32_0 = arith.constant 0 : i32
    %c0_i32_1 = arith.constant 0 : i32
    return %c0_i32, %c0_i32_0 : i32, i32
  }
  func.func @transform_24(%arg0: i32, %arg1: i32) -> (i32, i32, i32) {
    %c0_i32 = arith.constant 0 : i32
    %c0_i32_0 = arith.constant 0 : i32
    %c0_i32_1 = arith.constant 0 : i32
    return %arg0, %c0_i32, %c0_i32_0 : i32, i32, i32
  }
}

</mosaic_0001>

<bundles_post_ra>
// kernel: vit_forward.1
= control target key start
LH: loop header
LB: loop body
LE: loop exit
PB: predicated region body
PF: predicated region fallthrough
CT: control target
= control target key end

     0   :  { %s5431_s0 = inlined_call_operand.vmem [shape: f32[2,24,256], index: 0, kind: input, shape index: {}]   ;;  %s5432_s1 = inlined_call_operand.vmem [shape: f32[1,24,32], index: 1, kind: input, shape index: {}]   ;;  %s5433_s2 = inlined_call_operand.vmem [shape: f32[1,256], index: 2, kind: input, shape index: {}]   ;;  %s5434_s3 = inlined_call_operand.vmem [shape: f32[1,256], index: 3, kind: input, shape index: {}]   ;;  %s5435_s4 = inlined_call_operand.vmem [shape: bf16[256,32], index: 4, kind: input, shape index: {}]   ;;  %s5436_s5 = inlined_call_operand.vmem [shape: f32[1,32], index: 5, kind: input, shape index: {}]   ;;  %s5437_s6 = inlined_call_operand.vmem [shape: f32[2,1,32], index: 6, kind: input, shape index: {}]   ;;  %s5438_s7 = inlined_call_operand.vmem [shape: f32[2,1,32], index: 7, kind: input, shape index: {}]   ;;  %s5439_s8 = inlined_call_operand.vmem [shape: bf16[2,4,32,8], index: 8, kind: input, shape index: {}]   ;;  %s5440_s9 = inlined_call_operand.vmem [shape: bf16[2,4,32,8], index: 9, kind: input, shape index: {}]   ;;  %s5441_s10 = inlined_call_operand.vmem [shape: bf16[2,4,32,8], index: 10, kind: input, shape index: {}]   ;;  %s5442_s11 = inlined_call_operand.vmem [shape: bf16[2,4,8,32], index: 11, kind: input, shape index: {}]   ;;  %s5443_s12 = inlined_call_operand.vmem [shape: f32[2,1,32], index: 12, kind: input, shape index: {}]   ;;  %s5444_s13 = inlined_call_operand.vmem [shape: f32[2,1,1], index: 13, kind: input, shape index: {}]   ;;  %s5445_s14 = inlined_call_operand.vmem [shape: f32[2,1,32], index: 14, kind: input, shape index: {}]   ;;  %s5446_s15 = inlined_call_operand.vmem [shape: f32[2,1,32], index: 15, kind: input, shape index: {}]   ;;  %s5447_s16 = inlined_call_operand.vmem [shape: bf16[2,32,64], index: 16, kind: input, shape index: {}]   ;;  %s5448_s17 = inlined_call_operand.vmem [shape: f32[2,1,64], index: 17, kind: input, shape index: {}]   ;;  %s5449_s18 = inlined_call_operand.vmem [shape: bf16[2,64,32], index: 18, kind: input, shape index: {}]   ;;  %s5450_s19 = inlined_call_operand.vmem [shape: f32[2,1,32], index: 19, kind: input, shape index: {}]   ;;  %s5451_s20 = inlined_call_operand.vmem [shape: f32[1,32], index: 20, kind: input, shape index: {}]   ;;  %s5452_s21 = inlined_call_operand.vmem [shape: f32[1,32], index: 21, kind: input, shape index: {}]   ;;  %s5453_s22 = inlined_call_operand.vmem [shape: bf16[32,128], index: 22, kind: input, shape index: {}]   ;;  %s5454_s23 = inlined_call_operand.vmem [shape: f32[1,128], index: 23, kind: input, shape index: {}]   ;;  %s5455_s24 = inlined_call_operand.hbm [shape: f32[2,1,128], index: 24, kind: output, shape index: {}]  }
   0x1   :  { %5472 = sst [smem:[#allocation18_spill]] %s5431_s0 }
   0x2   :  { %5473 = sst [smem:[#allocation19_spill]] %s5432_s1 }
   0x3   :  { %5474 = sst [smem:[#allocation20_spill]] %s5433_s2 }
   0x4   :  { %5475 = sst [smem:[#allocation21_spill]] %s5434_s3 }
   0x5   :  { %5476 = sst [smem:[#allocation22_spill]] %s5435_s4 }
   0x6   :  { %5477 = sst [smem:[#allocation23_spill]] %s5436_s5 }
   0x7   :  { %5478 = sst [smem:[#allocation24_spill]] %s5437_s6 }
   0x8   :  { %5479 = sst [smem:[#allocation25_spill]] %s5438_s7 }
   0x9   :  { %5480 = sst [smem:[#allocation26_spill]] %s5439_s8 }
   0xa   :  { %5481 = sst [smem:[#allocation27_spill]] %s5440_s9 }
   0xb   :  { %5482 = sst [smem:[#allocation28_spill]] %s5441_s10 }
   0xc   :  { %5483 = sst [smem:[#allocation29_spill]] %s5442_s11 }
   0xd   :  { %5484 = sst [smem:[#allocation30_spill]] %s5450_s19 }
   0xe   :  { %5485 = sst [smem:[#allocation31_spill]] %s5451_s20 }
   0xf   :  { %5486 = sst [smem:[#allocation32_spill]] %s5452_s21 }
  0x10   :  { %5487 = sst [smem:[#allocation33_spill]] %s5453_s22 }
  0x11   :  { %5488 = sst [smem:[#allocation34_spill]] %s5454_s23 }
  0x12   :  { %5489 = sst [smem:[#allocation35_spill]] %s5455_s24 }
  0x13   :  { %29 = vsyncpa [#allocation4], 0 }
  0x14   :  { %31 = vsyncpa [#allocation4 + $0x1], 0  ;;  %s4682_s5 = smov 0   ;;  %s4684_s26 = smov 0  }
  0x15   :  { %s4686_s27 = smov 0   ;;  %s4688_s28 = smov 0  }
  0x16   :  { %s4690_s6 = smov 0   ;;  %s4692_s2 = smov 0  }
  0x17   :  { %s4694_s29 = smov 0   ;;  %s4696_s0 = smov 0  }
  0x18 LB: > { %5490 = sst [smem:[#allocation6_spill]] %s4523_s5  ;;  %s3734_s7 = sadd.s32 4294967295, %s4551_s0   ;;  %s4551_s0 = sphi %s4696_s0, %s37_s0   ;;  %s4547_s29 = sphi %s4694_s29, %s5553_s29   ;;  %s4543_s2 = sphi %s4692_s2, %s5552_s2   ;;  %s4539_s6 = sphi %s4690_s6, %s5551_s6   ;;  %s4535_s28 = sphi %s4688_s28, %s5550_s28   ;;  %s4531_s27 = sphi %s4686_s27, %s5556_s27   ;;  %s4527_s26 = sphi %s4684_s26, %s5555_s26   ;;  %s4523_s5 = sphi %s4682_s5, %s5554_s5  }
  0x19   : > { %5491 = sst [smem:[#allocation7_spill]] %s4531_s27  ;;  %s3735_s30 = sadd.s32 4294967294, %s4551_s0  }
  0x1a   : > { %5492 = sst [smem:[#allocation8_spill]] %s4535_s28  ;;  %s46_s3 = sadd.s32 1, %s4543_s2 }
  0x1b   : > { %5493 = sst [smem:[#allocation9_spill]] %s4539_s6  ;;  %p47_p0 = scmp.ge.s32.totalorder %s46_s3, 2 }
  0x1c   : > { %5494 = sst [smem:[#allocation10_spill]] %s4543_s2  ;;  %s49_s25 = sadd.s32 1, %s4547_s29 }
  0x1d   : > { %5495 = sst [smem:[#allocation11_spill]] %s4547_s29  ;;  %p645_p1 = scmp.ne.s32.totalorder %s4531_s27, %s4527_s26 }
  0x1e   : > { %5496 = sst [smem:[#allocation12_spill]] %s4551_s0  ;;  %p646_p2 = scmp.eq.s32.totalorder %s3734_s7, 3 }
  0x1f   : > { %s5558_s3 = smov (%p47_p0, %s46_s3), 0  ;;  %s5560_s25 = smov (!%p47_p0, %s49_s25), %s4547_s29 }
  0x20   : > { %5497 = sst [smem:[#allocation13_spill]] %s5558_s3  ;;  %p4731_p3 = por %p646_p2, %p645_p1 }
  0x21   : > { %p651_p4 = scmp.ne.s32.totalorder %s4527_s26, %s4523_s5  ;;  %p51_p5 = scmp.ge.s32.totalorder %s5560_s25, 2 }
  0x22   : > { %s5498_s8 = scalar_select %p4731_p3, 1, 0 }
  0x23   : > { %p652_p6 = scmp.eq.s32.totalorder %s3735_s30, 3  ;;  %p3738_p7 = scmp.ge.s32.totalorder %s4551_s0, 1 }
  0x24   : > { %5499 = sst [smem:[#allocation14_spill]] %s5498_s8  ;;  %p801_p8 = scmp.lt.s32.totalorder %s4551_s0, 5 }
  0x25   : > { %s5562_s25 = smov (%p51_p5, %s5560_s25), 0  ;;  %p4741_p9 = por %p652_p6, %p651_p4 }
  0x26   : > { %5500 = sst [smem:[#allocation15_spill]] %s5562_s25  ;;  %p802_p10 = pnand %p3738_p7, %p801_p8 }
  0x27   : > { %s5501_s4 = scalar_select %p4741_p9, 1, 0 }
  0x28   : > { %s632_s1 = ssub.s32 %s4547_s29, %s5562_s25  ;;  %s635_s7 = sadd.s32 1, %s4531_s27 }
  0x29   : > { %5502 = sst [smem:[#allocation16_spill]] %s5501_s4  ;;  %p633_p11 = scmp.eq.s32.totalorder %s632_s1, 0 }
  0x2a   : > { %805 = sbr.rel (%p802_p10) target bundleno = 3560 (0xde8), region = 116  ;;  %p920_p12 = scmp.lt.s32.totalorder (!%p802_p10), %s4539_s6, 1 }
  0x2b   : > { %s4749_s3 = scalar_select %p633_p11, %s4531_s27, %s635_s7  }
  0x2c   : > { %p925_p13 = scmp.lt.s32.totalorder (!%p802_p10), %s4535_s28, 1  ;;  %s5508_s9 = sld [smem:[#allocation27_spill]] (!%p802_p10) }
  0x2d   : > { %5503 = sst [smem:[#allocation17_spill]] %s4749_s3  ;;  %s5509_s10 = sld [smem:[#allocation28_spill]] (!%p802_p10) }
  0x2e   : > { %s5510_s11 = sld [smem:[#allocation29_spill]] (!%p802_p10)  ;;  %s5511_s7 = sld [smem:[#allocation30_spill]] (!%p802_p10) }
  0x2f   : > { %s5512_s27 = sand.u32 (!%p802_p10), 1, %s4527_s26  }
  0x31   : > { %s921_s2 = scalar_select %p920_p12, %s4539_s6, 1 }
  0x32   : > { %s4756_s5 = scalar_select %p925_p13, %s4535_s28, 1 }
  0x33   : > { %s4250_s1 = smul.u32 48, %s921_s2  ;;  %s5506_s6 = sld [smem:[#allocation18_spill]] }
  0x34   : > { %s3867_s21 = sshll.u32 %s4756_s5, 6  ;;  %s5507_s28 = sld [smem:[#allocation26_spill]] }
  0x35   : > { %s4778_s29 = scalar_lea.vmem %s5508_s9, %s3867_s21  ;;  %s4783_s3 = scalar_lea.vmem %s5509_s10, %s3867_s21 }
  0x36   : > { %s3870_s24 = sshll.u32 %s4756_s5, 4  ;;  %s970_s20 = scalar_lea.vmem %s5448_s17, %s4756_s5 }
  0x37   : > { %s4789_s4 = scalar_lea.vmem %s5510_s11, %s3870_s24  ;;  %s3872_s22 = sshll.u32 %s4756_s5, 5 }
  0x38   : > { %s4820_s19 = scalar_lea.vmem %s5449_s18, %s3872_s22  ;;  %s4828_s9 = scalar_lea.vmem [#allocation3], %s5512_s27 }
  0x39   : > { %s924_s23 = scalar_lea.vmem %s5506_s6, %s4250_s1  ;;  %s4810_s6 = scalar_lea.vmem %s5447_s16, %s3870_s24 }
  0x3a   : > { %s4773_s2 = scalar_lea.vmem %s5507_s28, %s3867_s21  ;;  %s978_s21 = scalar_lea.vmem %s5511_s7, %s4756_s5 }
  0x3b   : > { %s5513_s10 = sld [smem:[#allocation8_spill]] }
  0x41   : > { %p3752_p0 = scmp.ne.s32.totalorder %s5513_s10, 0 }
  0x42   : > { %v984_v0 = vld [vmem:[%s924_s23] sm:$0xff] (!%p3752_p0)  ;;  %v985_v1 = vld [vmem:[%s924_s23 + $0x8] sm:$0xff] (!%p3752_p0)  ;;  %v986_v5 = vld [vmem:[%s924_s23 + $0x10] sm:$0xff] (!%p3752_p0)  ;;  %s5514_s22 = sld [smem:[#allocation22_spill]] (!%p3752_p0)  ;;  %v990_v11 = vlaneseq (!%p3752_p0)  ;;  %s5515_s27 = sld [smem:[#allocation20_spill]] (!%p3752_p0)  ;;  %vm1300_vm3 = vcmask (!%p3752_p0), 261120  }
  0x43   : > { %983 = sbr.rel (%p3752_p0) target bundleno = 613 (0x265), region = 120  ;;  %v988_v2 = vld [vmem:[%s924_s23 + $0x20] sm:$0xff] (!%p3752_p0)  ;;  %v993_v3 = vadd.f32 (!%p3752_p0), %v985_v1, %v984_v0  ;;  %v989_v4 = vld [vmem:[%s924_s23 + $0x28] sm:$0xff] (!%p3752_p0)  ;;  %v987_v6 = vld [vmem:[%s924_s23 + $0x18] sm:$0xff] (!%p3752_p0)  ;;  %s5516_s24 = sld [smem:[#allocation21_spill]] (!%p3752_p0) }
  0x44   : > { %v999_v7 = vadd.f32 (!%p3752_p0), %v989_v4, %v988_v2  ;;  %v996_v8 = vadd.f32 (!%p3752_p0), %v987_v6, %v986_v5  ;;  %v991_v12 = vand.u32 (!%p3752_p0), 127, %v990_v11  ;;  %v4908_v61 = vshrl.u32 (!%p3752_p0), %v990_v11, 7  ;;  %s5517_s23 = sld [smem:[#allocation23_spill]] (!%p3752_p0)  ;;  %s5518_s28 = sld [smem:[#allocation19_spill]] (!%p3752_p0) }
  0x45   : > { %994 = vadd.xlane.f32.xlu0 (!%p3752_p0), %v993_v3 }
  0x46   : > { %1000 = vadd.xlane.f32.xlu1 (!%p3752_p0), %v999_v7  ;;  %v992_v13 = vadd.s32 (!%p3752_p0), 128, %v991_v12  ;;  %v1053_v62 = vsub.s32 (!%p3752_p0), 0, %v4908_v61  ;;  %v1057_v63 = vsub.s32 (!%p3752_p0), 1, %v4908_v61  ;;  %vm1276_vm2 = vcmp.ge.s32.totalorder (!%p3752_p0), %v4908_v61, 1 }
  0x48   : > { %v4325_v9 = vld [vmem:[%s5514_s22 + $0x40] sm:$0xff] (!%p3752_p0)   ;;  %vm1006_vm0 = vcmp.lt.s32.totalorder (!%p3752_p0), %v992_v13, 240  ;;  %v4327_v38 = vld [vmem:[%s5514_s22 + $0x48] sm:$0xff] (!%p3752_p0)   ;;  %v4329_v40 = vld [vmem:[%s5514_s22 + $0x50] sm:$0xff] (!%p3752_p0)  }
  0x49   : > { %997 = vadd.xlane.f32.xlu0 (!%p3752_p0), %v996_v8  ;;  %v4326_v10 = vld [vmem:[%s5514_s22] sm:$0xff] (!%p3752_p0)   ;;  %3873 = vmatprep.subr.bf16.mxu0 (!%p3752_p0), %v4325_v9  ;;  %v4328_v39 = vld [vmem:[%s5514_s22 + $0x8] sm:$0xff] (!%p3752_p0)   ;;  %v4330_v41 = vld [vmem:[%s5514_s22 + $0x10] sm:$0xff] (!%p3752_p0)  }
  0x4a   : > { %4218 = vmatprep.subr.bf16.mxu1 %v4325_v9  ;;  %3874 = vmatpush3.bf16.msra.mxu0 %v4326_v10  ;;  %v4331_v42 = vld [vmem:[%s5514_s22 + $0x58] sm:$0xff]   ;;  %v4333_v44 = vld [vmem:[%s5514_s22 + $0x60] sm:$0xff]   ;;  %v4335_v46 = vld [vmem:[%s5514_s22 + $0x68] sm:$0xff]   ;;  %s5519_s30 = smov %s5518_s28 }
  0x4b   : > { %4226 = vmatpush3.bf16.msra.mxu1 %v4326_v10  ;;  %3875 = vmatprep.subr.bf16.mxu0 %v4327_v38  ;;  %v4332_v43 = vld [vmem:[%s5514_s22 + $0x18] sm:$0xff]   ;;  %v4334_v45 = vld [vmem:[%s5514_s22 + $0x20] sm:$0xff]   ;;  %v4336_v47 = vld [vmem:[%s5514_s22 + $0x28] sm:$0xff]  }
  0x4c   : > { %4219 = vmatprep.subr.bf16.mxu1 %v4327_v38  ;;  %v4337_v48 = vld [vmem:[%s5514_s22 + $0x70] sm:$0xff]   ;;  %v4339_v50 = vld [vmem:[%s5514_s22 + $0x78] sm:$0xff]  }
  0x4d   : > { %v4338_v49 = vld [vmem:[%s5514_s22 + $0x30] sm:$0xff]   ;;  %v4340_v51 = vld [vmem:[%s5514_s22 + $0x38] sm:$0xff]  }
  0x4e   : > { %3876 = vmatpush3.bf16.msra.mxu0 %v4328_v39 }
  0x4f   : > { %4227 = vmatpush3.bf16.msra.mxu1 %v4328_v39  ;;  %3877 = vmatprep.subr.bf16.mxu0 %v4329_v40 }
  0x50   : > { %4220 = vmatprep.subr.bf16.mxu1 %v4329_v40 }
  0x52   : > { %3878 = vmatpush3.bf16.msra.mxu0 %v4330_v41 }
  0x53   : > { %4228 = vmatpush3.bf16.msra.mxu1 %v4330_v41  ;;  %3879 = vmatprep.subr.bf16.mxu0 %v4331_v42 }
  0x54   : > { %4221 = vmatprep.subr.bf16.mxu1 %v4331_v42 }
  0x56   : > { %3880 = vmatpush3.bf16.msra.mxu0 %v4332_v43 }
  0x57   : > { %4229 = vmatpush3.bf16.msra.mxu1 %v4332_v43  ;;  %3881 = vmatprep.subr.bf16.mxu0 %v4333_v44  ;;  %v1296_v43 = vld [vmem:[%s5518_s28 + $0x10] sm:$0xff] }
  0x58   : > { %4222 = vmatprep.subr.bf16.mxu1 %v4333_v44 }
  0x5a   : > { %3882 = vmatpush3.bf16.msra.mxu0 %v4334_v45 }
  0x5b   : > { %4230 = vmatpush3.bf16.msra.mxu1 %v4334_v45  ;;  %3883 = vmatprep.subr.bf16.mxu0 %v4335_v46 }
  0x5c   : > { %4223 = vmatprep.subr.bf16.mxu1 %v4335_v46  ;;  %v1294_v46 = vld [vmem:[%s5519_s30] sm:$0xff] }
  0x5e   : > { %3884 = vmatpush3.bf16.msra.mxu0 %v4336_v47 }
  0x5f   : > { %4231 = vmatpush3.bf16.msra.mxu1 %v4336_v47  ;;  %3885 = vmatprep.subr.bf16.mxu0 %v4337_v48 }
  0x60   : > { %4224 = vmatprep.subr.bf16.mxu1 %v4337_v48 }
  0x62   : > { %3886 = vmatpush3.bf16.msra.mxu0 %v4338_v49 }
  0x63   : > { %4232 = vmatpush3.bf16.msra.mxu1 %v4338_v49  ;;  %3887 = vmatprep.subr.bf16.mxu0 %v4339_v50  ;;  %v1295_v49 = vld [vmem:[%s5519_s30 + $0x8] sm:$0xff] }
  0x64   : > { %4225 = vmatprep.subr.bf16.mxu1 %v4339_v50 }
  0x66   : > { %3888 = vmatpush3.bf16.msra.mxu0 %v4340_v51 }
  0x67   : > { %4233 = vmatpush3.bf16.msra.mxu1 %v4340_v51 }
  0xd2   : > { %v995_v14 = vpop.xlane.xlu0 %994 }
  0xd3   : > { %v1002_v15 = vmul.f32 0.004166667, %v995_v14  ;;  %v1001_v16 = vpop.xlane.xlu1 %1000 }
  0xd4   : > { %v1004_v17 = vmul.f32 0.004166667, %v1001_v16 }
  0xd5   : > { %v4838_v18 = vsub.f32 %v984_v0, %v1002_v15  ;;  %v1008_v19 = vsub.f32 %v985_v1, %v1002_v15  ;;  %v1049_v0 = vld [vmem:[%s5515_s27] sm:$0x3] }
  0xd6   : > { %v4840_v20 = vsub.f32 %v988_v2, %v1004_v17  ;;  %v1012_v21 = vsub.f32 %v989_v4, %v1004_v17  ;;  %v998_v22 = vpop.xlane.xlu0 %997  ;;  %v1054_v3 = vrot.slane %v1049_v0, %v1053_v62  ;;  %v1058_v4 = vrot.slane %v1049_v0, %v1057_v63 }
  0xd7   : > { %v1003_v23 = vmul.f32 0.004166667, %v998_v22  ;;  %v4843_v24 = vsel %vm1006_vm0, %v1008_v19, 0.0  ;;  %v1019_v25 = vmul.f32 %v4838_v18, %v4838_v18 }
  0xd8   : > { %v1020_v26 = vmul.f32 %v4843_v24, %v4843_v24  ;;  %v4850_v27 = vsel %vm1006_vm0, %v1012_v21, 0.0  ;;  %v1023_v28 = vmul.f32 %v4840_v20, %v4840_v20 }
  0xd9   : > { %v4854_v29 = vsub.f32 %v986_v5, %v1003_v23  ;;  %v1010_v30 = vsub.f32 %v987_v6, %v1003_v23  ;;  %v1024_v31 = vmul.f32 %v4850_v27, %v4850_v27  ;;  %v1067_v5 = vld [vmem:[%s5516_s24] sm:$0x3] }
  0xda   : > { %v1025_v32 = vadd.f32 %v1020_v26, %v1019_v25  ;;  %v1072_v9 = vrot.slane %v1067_v5, %v1053_v62  ;;  %v1076_v10 = vrot.slane %v1067_v5, %v1057_v63 }
  0xdb   : > { %v4859_v33 = vsel %vm1006_vm0, %v1010_v30, 0.0  ;;  %v1021_v34 = vmul.f32 %v4854_v29, %v4854_v29  ;;  %v1031_v35 = vadd.f32 %v1024_v31, %v1023_v28 }
  0xdc   : > { %1026 = vadd.xlane.f32.xlu1 %v1025_v32  ;;  %v1022_v36 = vmul.f32 %v4859_v33, %v4859_v33 }
  0xde   : > { %v1028_v37 = vadd.f32 %v1022_v36, %v1021_v34  ;;  %v3753_v34 = vld [vmem:[%s5517_s23] ss:$0 sm:$0xff] }
  0xe0   : > { %1032 = vadd.xlane.f32.xlu1 %v1031_v35  ;;  %1029 = vadd.xlane.f32.xlu0 %v1028_v37 }
 0x169   : > { %v1027_v52 = vpop.xlane.xlu1 %1026 }
 0x16a   : > { %v1034_v53 = vmul.f32 0.004166667, %v1027_v52 }
 0x16c   : > { %v1037_v54 = vadd.f32 1e-05, %v1034_v53 }
 0x16d   : > { %v1033_v55 = vpop.xlane.xlu1 %1032  ;;  %v1030_v56 = vpop.xlane.xlu0 %1029 }
 0x16e   : > { %4341 = vrsqrt.f32 %v1037_v54  ;;  %v1036_v57 = vmul.f32 0.004166667, %v1033_v55  ;;  %v1035_v58 = vmul.f32 0.004166667, %v1030_v56 }
 0x170   : > { %v1039_v59 = vadd.f32 1e-05, %v1036_v57  ;;  %v1038_v60 = vadd.f32 1e-05, %v1035_v58 }
 0x172   : > { %4343 = vrsqrt.f32 %v1039_v59 }
 0x173   : > { %4345 = vrsqrt.f32 %v1038_v60 }
 0x178   : > { %v4342_v1 = vpop.eup %4341 }
 0x179   : > { %v1044_v2 = vmul.f32 %v4342_v1, %v4843_v24  ;;  %v1043_v6 = vmul.f32 %v4342_v1, %v4838_v18 }
 0x17b   : > { %v1062_v14 = vmul.f32 %v1058_v4, %v1044_v2  ;;  %v1061_v16 = vmul.f32 %v1054_v3, %v1043_v6 }
 0x17c   : > { %v4344_v7 = vpop.eup %4343 }
 0x17d   : > { %v4346_v8 = vpop.eup %4345  ;;  %v1048_v11 = vmul.f32 %v4344_v7, %v4850_v27  ;;  %v1047_v12 = vmul.f32 %v4344_v7, %v4840_v20  ;;  %v1080_v24 = vadd.f32 %v1076_v10, %v1062_v14  ;;  %v1079_v26 = vadd.f32 %v1072_v9, %v1061_v16 }
 0x17e   : > { %v1046_v13 = vmul.f32 %v4346_v8, %v4859_v33  ;;  %v1045_v15 = vmul.f32 %v4346_v8, %v4854_v29  ;;  %v1275_v29 = vadd.s32 16, %v4908_v61 }
 0x17f   : > { %v1066_v17 = vmul.f32 %v1058_v4, %v1048_v11  ;;  %v1065_v19 = vmul.f32 %v1054_v3, %v1047_v12 }
 0x180   : > { %v1064_v21 = vmul.f32 %v1058_v4, %v1046_v13  ;;  %v1063_v22 = vmul.f32 %v1054_v3, %v1045_v15  ;;  %vm1281_vm1 = vcmp.lt.s32.totalorder %v1275_v29, 17 }
 0x181   : > { %v1084_v23 = vadd.f32 %v1076_v10, %v1066_v17  ;;  %v1083_v18 = vadd.f32 %v1072_v9, %v1065_v19 }
 0x182   : > { %v1082_v25 = vadd.f32 %v1076_v10, %v1064_v21  ;;  %v1081_v28 = vadd.f32 %v1072_v9, %v1063_v22 }
 0x183   : > { %v1088_v30 = vpack.c.bf16 %v1084_v23, %v1084_v23  ;;  %v1087_v27 = vpack.c.bf16 %v1083_v18, %v1083_v18 }
 0x184   : > { %v1086_v31 = vpack.c.bf16 %v1082_v25, %v1080_v24  ;;  %v1085_v20 = vpack.c.bf16 %v1081_v28, %v1079_v26 }
 0x185   : > { %1264 = vmatprep.mubr.bf16.mxu1 %v1088_v30 }
 0x186   : > { %1256 = vmatprep.mubr.bf16.mxu0 %v1086_v31  ;;  %1265 = vmatmul.mubr.bf16.vlgmr.msra.gmra.mrb[0].mxu1 %v1087_v27 }
 0x187   : > { %1257 = vmatmul.mubr.bf16.vlgmr.msra.gmra.mrb[0].mxu0 %v1085_v20 }
 0x259   : > { %v3895_v32 = vpop.f32.mrb[0].mxu1 }
 0x25a   : > { %v3889_v33 = vpop.f32.mrb[0].mxu0  ;;  %v3896_v35 = vpop.f32.mrb[1].mxu1 }
 0x25b   : > { %v3890_v36 = vpop.f32.mrb[1].mxu0  ;;  %v3897_v37 = vadd.f32 %v3896_v35, %v3895_v32  ;;  %v3898_v38 = vpop.f32.mrb[2].mxu1 }
 0x25c   : > { %v3891_v39 = vadd.f32 %v3890_v36, %v3889_v33  ;;  %v3892_v40 = vpop.f32.mrb[2].mxu0  ;;  %v3899_v41 = vpop.f32.mrb[3].mxu1 }
 0x25d   : > { %v1267_v42 = vadd.f32 %v3897_v37, %v3753_v34  ;;  %v3893_v44 = vpop.f32.mrb[3].mxu0 }
 0x25e   : > { %v1259_v45 = vadd.f32 %v3891_v39, %v3753_v34  ;;  %v3894_v47 = vadd.f32 %v3893_v44, %v3892_v40 }
 0x25f   : > { %v1293_v48 = vsel %vm1281_vm1, %v1267_v42, 0.0 }
 0x260   : > { %v1291_v50 = vsel %vm1276_vm2, %v1259_v45, 0.0  ;;  %v1299_v51 = vadd.f32 %v1296_v43, %v1293_v48  ;;  %v1262_v52 = vadd.f32 %v3894_v47, %v3753_v34 }
 0x261   : > { %v1297_v53 = vadd.f32 %v1294_v46, %v1291_v50 }
 0x262   : > { %1303 = vst.msk [vmem:[#allocation2 + $0x10] sm:$0xff] %vm1300_vm3, %v1299_v51  ;;  %v1298_v54 = vadd.f32 %v1295_v49, %v1262_v52 }
 0x263   : > { %1301 = vst.msk [vmem:[#allocation2] sm:$0xff] %vm1300_vm3, %v1297_v53 }
 0x264   : > { %1302 = vst.msk [vmem:[#allocation2 + $0x8] sm:$0xff] %vm1300_vm3, %v1298_v54 }
 0x265 PF: > { %vm1309_vm4 = vcmask 261120   ;;  %v4348_v12 = vld [vmem:[%s4773_s2] sm:$0xff]   ;;  %v4349_v13 = vld [vmem:[%s4773_s2 + $0x10] sm:$0xff]   ;;  %v4350_v14 = vld [vmem:[%s4773_s2 + $0x8] sm:$0xff]   ;;  %s5520_s8 = sld [smem:[#allocation24_spill]]  ;;  %s5522_s28 = sld [smem:[#allocation25_spill]] }
 0x266   : > { %4006 = vmatprep.subr.bf16.mxu0 %v4348_v12  ;;  %4014 = vmatprep.subr.bf16.mxu1 %v4349_v13  ;;  %v4351_v15 = vld [vmem:[%s4773_s2 + $0x18] sm:$0xff]   ;;  %v4352_v16 = vld [vmem:[%s4773_s2 + $0x20] sm:$0xff]   ;;  %v4353_v17 = vld [vmem:[%s4773_s2 + $0x30] sm:$0xff]   ;;  %vm2160_vm5 = vcmask 64512   ;;  %vm2609_vm6 = vcmask 1043456   ;;  %vm2454_vm10 = vcmask 195584   ;;  %s5531_s10 = scalar_lea.vmem %s5443_s12, %s4756_s5  ;;  %s5532_s24 = scalar_lea.vmem %s5445_s14, %s4756_s5 }
 0x267   : > { %4007 = vmatpush3.bf16.msra.mxu0 %v4348_v12  ;;  %4015 = vmatpush3.bf16.msra.mxu1 %v4349_v13  ;;  %v4354_v43 = vld [vmem:[%s4773_s2 + $0x28] sm:$0xff]   ;;  %v4355_v44 = vld [vmem:[%s4773_s2 + $0x38] sm:$0xff]   ;;  %v4356_v45 = vld [vmem:[%s4778_s29] sm:$0xff]   ;;  %vm3366_vm2 = vcmask 523264  }
 0x268   : > { %4008 = vmatprep.subr.bf16.mxu0 %v4350_v14  ;;  %4016 = vmatprep.subr.bf16.mxu1 %v4351_v15  ;;  %v4357_v46 = vld [vmem:[%s4778_s29 + $0x10] sm:$0xff]   ;;  %v4358_v47 = vld [vmem:[%s4778_s29 + $0x8] sm:$0xff]   ;;  %v4359_v48 = vld [vmem:[%s4778_s29 + $0x18] sm:$0xff]  }
 0x269   : > { %v1306_v56 = vld [vmem:[#allocation2 + $0x10] sm:$0xff]  ;;  %v4360_v49 = vld [vmem:[%s4778_s29 + $0x20] sm:$0xff]   ;;  %v4362_v51 = vld [vmem:[%s4778_s29 + $0x28] sm:$0xff]  }
 0x26a   : > { %v1304_v55 = vld [vmem:[#allocation2] sm:$0xff]  ;;  %v1316_v59 = vsel %vm1309_vm4, %v1306_v56, 0.0  ;;  %v4361_v50 = vld [vmem:[%s4778_s29 + $0x30] sm:$0xff]   ;;  %v4363_v52 = vld [vmem:[%s4778_s29 + $0x38] sm:$0xff]  }
 0x26b   : > { %v1305_v57 = vld [vmem:[#allocation2 + $0x8] sm:$0xff]  ;;  %v1310_v58 = vsel %vm1309_vm4, %v1304_v55, 0.0  ;;  %1317 = vadd.xlane.f32.xlu1 %v1316_v59  ;;  %4009 = vmatpush3.bf16.msra.mxu0 %v4350_v14  ;;  %s5521_s23 = scalar_lea.vmem %s5520_s8, %s4756_s5  ;;  %s5523_s25 = scalar_lea.vmem %s5522_s28, %s4756_s5  ;;  %v4364_v53 = vld [vmem:[%s4783_s3] sm:$0xff]   ;;  %v4365_v54 = vld [vmem:[%s4783_s3 + $0x10] sm:$0xff]  }
 0x26c   : > { %v1313_v60 = vsel %vm1309_vm4, %v1305_v57, 0.0  ;;  %1311 = vadd.xlane.f32.xlu0 %v1310_v58  ;;  %4017 = vmatpush3.bf16.msra.mxu1 %v4351_v15  ;;  %v3770_v31 = vld [vmem:[%s5521_s23] ss:$0 sm:$0xff]  ;;  %v4369_v58 = vld [vmem:[%s4783_s3 + $0x30] sm:$0xff]   ;;  %v4370_v59 = vld [vmem:[%s4783_s3 + $0x28] sm:$0xff]   ;;  %s5533_s23 = scalar_lea.vmem %s5446_s15, %s4756_s5 }
 0x26d   : > { %4022 = vmatprep.subr.bf16.mxu0 %v4352_v16  ;;  %4030 = vmatprep.subr.bf16.mxu1 %v4353_v17  ;;  %v3771_v35 = vld [vmem:[%s5523_s25] ss:$0 sm:$0xff] }
 0x270   : > { %1314 = vadd.xlane.f32.xlu0 %v1313_v60  ;;  %v4371_v60 = vld [vmem:[%s4783_s3 + $0x38] sm:$0xff]  }
 0x2f8   : > { %v1318_v62 = vpop.xlane.xlu1 %1317 }
 0x2f9   : > { %v1312_v61 = vpop.xlane.xlu0 %1311  ;;  %v1322_v0 = vmul.f32 0.03125, %v1318_v62  ;;  %v4553_v62 = vmov 0  }
 0x2fa   : > { %v1320_v63 = vmul.f32 0.03125, %v1312_v61  ;;  %4347 = vset.pattern.permute.xlu0 %v4553_v62 }
 0x2fb   : > { %v1325_v2 = vsub.f32 %v1306_v56, %v1322_v0  ;;  %v4367_v56 = vld [vmem:[%s4783_s3 + $0x18] sm:$0xff]  }
 0x2fc   : > { %v1323_v1 = vsub.f32 %v1304_v55, %v1320_v63  ;;  %v4366_v55 = vld [vmem:[%s4783_s3 + $0x8] sm:$0xff]  }
 0x2fd   : > { %v1315_v3 = vpop.xlane.xlu0 %1314  ;;  %v1328_v6 = vmul.f32 %v1325_v2, %v1325_v2 }
 0x2fe   : > { %v1321_v4 = vmul.f32 0.03125, %v1315_v3  ;;  %v1326_v5 = vmul.f32 %v1323_v1, %v1323_v1 }
 0x2ff   : > { %v1335_v9 = vsel %vm1309_vm4, %v1328_v6, 0.0 }
 0x300   : > { %v1324_v7 = vsub.f32 %v1305_v57, %v1321_v4  ;;  %v1329_v8 = vsel %vm1309_vm4, %v1326_v5, 0.0  ;;  %v4368_v57 = vld [vmem:[%s4783_s3 + $0x20] sm:$0xff]   ;;  %s5524_s3 = scalar_lea.vmem %s5444_s13, %s4756_s5  ;;  %s5535_s5 = sld [smem:[#allocation8_spill]] }
 0x301   : > { %1330 = vadd.xlane.f32.xlu1 %v1329_v8  ;;  %v3828_v61 = vld [vmem:[%s5524_s3] ss:$0 sm:$0xff] }
 0x302   : > { %v1327_v10 = vmul.f32 %v1324_v7, %v1324_v7 }
 0x304   : > { %v1332_v11 = vsel %vm1309_vm4, %v1327_v10, 0.0 }
 0x305   : > { %1336 = vadd.xlane.f32.xlu1 %v1335_v9  ;;  %1333 = vadd.xlane.f32.xlu0 %v1332_v11 }
 0x306   : > { %p3860_p1 = scmp.ne.s32.totalorder %s5535_s5, 1 }
 0x307   : > { %vm3433_vm3 = vcmask (!%p3860_p1), 253952   ;;  %s5536_s2 = sld [smem:[#allocation33_spill]] (!%p3860_p1)  ;;  %s5538_s11 = sld [smem:[#allocation31_spill]] (!%p3860_p1) }
 0x308   : > { %s5539_s7 = sld [smem:[#allocation32_spill]] (!%p3860_p1)  ;;  %s5540_s1 = sld [smem:[#allocation34_spill]] (!%p3860_p1) }
 0x30d   : > { %s5537_s3 = smov (!%p3860_p1), %s5536_s2 }
 0x31b   : > { %2408 = vperm.xlu0 %4347, %v3828_v61  }
 0x38e   : > { %v1331_v19 = vpop.xlane.xlu1 %1330 }
 0x38f   : > { %v1338_v21 = vmul.f32 0.03125, %v1331_v19 }
 0x391   : > { %v1341_v22 = vadd.f32 1e-05, %v1338_v21 }
 0x392   : > { %v1337_v23 = vpop.xlane.xlu1 %1336  ;;  %v1334_v18 = vpop.xlane.xlu0 %1333 }
 0x393   : > { %4378 = vrsqrt.f32 %v1341_v22  ;;  %v1340_v24 = vmul.f32 0.03125, %v1337_v23  ;;  %v1339_v25 = vmul.f32 0.03125, %v1334_v18 }
 0x395   : > { %v1343_v26 = vadd.f32 1e-05, %v1340_v24  ;;  %v1342_v28 = vadd.f32 1e-05, %v1339_v25 }
 0x397   : > { %4380 = vrsqrt.f32 %v1343_v26 }
 0x398   : > { %4382 = vrsqrt.f32 %v1342_v28 }
 0x39d   : > { %v4379_v30 = vpop.eup %4378 }
 0x39e   : > { %v1347_v27 = vmul.f32 %v4379_v30, %v1323_v1 }
 0x3a0   : > { %v1356_v33 = vmul.f32 %v3770_v31, %v1347_v27 }
 0x3a1   : > { %v4381_v20 = vpop.eup %4380 }
 0x3a2   : > { %v4383_v29 = vpop.eup %4382  ;;  %v1349_v32 = vmul.f32 %v4381_v20, %v1325_v2  ;;  %v1365_v39 = vadd.f32 %v3771_v35, %v1356_v33 }
 0x3a3   : > { %v1348_v34 = vmul.f32 %v4383_v29, %v1324_v7 }
 0x3a4   : > { %v1358_v36 = vmul.f32 %v3770_v31, %v1349_v32 }
 0x3a5   : > { %v1357_v37 = vmul.f32 %v3770_v31, %v1348_v34 }
 0x3a6   : > { %v1367_v38 = vadd.f32 %v3771_v35, %v1358_v36 }
 0x3a7   : > { %v1366_v40 = vadd.f32 %v3771_v35, %v1357_v37 }
 0x3a8   : > { %v4960_v41 = vpack.c.bf16 %v1367_v38, %v1367_v38 }
 0x3a9   : > { %v4962_v42 = vpack.c.bf16 %v1366_v40, %v1365_v39 }
 0x3ab   : > { %4010 = vmatprep.mubr.msk.bf16.mxu0 %vm1309_vm4, %v4962_v42  ;;  %4018 = vmatprep.mubr.msk.bf16.mxu1 %vm1309_vm4, %v4962_v42 }
 0x3ac   : > { %4011 = vmatmul.mubr.msk.bf16.vlgmr.msra.gmra.mrb[0].mxu0 %vm1309_vm4, %v4960_v41  ;;  %4019 = vmatmul.mubr.msk.bf16.vlgmr.msra.gmra.mrb[0].mxu1 %vm1309_vm4, %v4960_v41 }
 0x3ad   : > { %4023 = vmatpush3.bf16.msra.mxu0 %v4352_v16  ;;  %4026 = vmatprep.mubr.msk.bf16.mxu0 %vm1309_vm4, %v4962_v42 }
 0x3ae   : > { %4031 = vmatpush3.bf16.msra.mxu1 %v4353_v17  ;;  %4034 = vmatprep.mubr.msk.bf16.mxu1 %vm1309_vm4, %v4962_v42 }
 0x3af   : > { %4024 = vmatprep.subr.bf16.mxu0 %v4354_v43  ;;  %4032 = vmatprep.subr.bf16.mxu1 %v4355_v44 }
 0x3b1   : > { %4025 = vmatpush3.bf16.msra.mxu0 %v4354_v43 }
 0x3b2   : > { %4033 = vmatpush3.bf16.msra.mxu1 %v4355_v44  ;;  %4038 = vmatprep.subr.bf16.mxu0 %v4356_v45 }
 0x3b3   : > { %4046 = vmatprep.subr.bf16.mxu1 %v4357_v46 }
 0x3b4   : > { %4027 = vmatmul.mubr.msk.bf16.vlgmr.msra.gmra.mrb[4].mxu0 %vm1309_vm4, %v4960_v41 }
 0x3b5   : > { %4035 = vmatmul.mubr.msk.bf16.vlgmr.msra.gmra.mrb[4].mxu1 %vm1309_vm4, %v4960_v41  ;;  %4039 = vmatpush3.bf16.msra.mxu0 %v4356_v45 }
 0x3b6   : > { %4042 = vmatprep.mubr.msk.bf16.mxu0 %vm1309_vm4, %v4962_v42  ;;  %4047 = vmatpush3.bf16.msra.mxu1 %v4357_v46 }
 0x3b7   : > { %4050 = vmatprep.mubr.msk.bf16.mxu1 %vm1309_vm4, %v4962_v42  ;;  %4040 = vmatprep.subr.bf16.mxu0 %v4358_v47 }
 0x3b8   : > { %4048 = vmatprep.subr.bf16.mxu1 %v4359_v48 }
 0x3b9   : > { %4041 = vmatpush3.bf16.msra.mxu0 %v4358_v47 }
 0x3ba   : > { %4049 = vmatpush3.bf16.msra.mxu1 %v4359_v48  ;;  %4054 = vmatprep.subr.bf16.mxu0 %v4360_v49 }
 0x3bb   : > { %4062 = vmatprep.subr.bf16.mxu1 %v4361_v50 }
 0x3bc   : > { %4043 = vmatmul.mubr.msk.bf16.vlgmr.msra.gmra.mrb[8].mxu0 %vm1309_vm4, %v4960_v41 }
 0x3bd   : > { %4051 = vmatmul.mubr.msk.bf16.vlgmr.msra.gmra.mrb[8].mxu1 %vm1309_vm4, %v4960_v41  ;;  %4055 = vmatpush3.bf16.msra.mxu0 %v4360_v49 }
 0x3be   : > { %4058 = vmatprep.mubr.msk.bf16.mxu0 %vm1309_vm4, %v4962_v42  ;;  %4063 = vmatpush3.bf16.msra.mxu1 %v4361_v50 }
 0x3bf   : > { %4066 = vmatprep.mubr.msk.bf16.mxu1 %vm1309_vm4, %v4962_v42  ;;  %4056 = vmatprep.subr.bf16.mxu0 %v4362_v51 }
 0x3c0   : > { %4064 = vmatprep.subr.bf16.mxu1 %v4363_v52 }
 0x3c1   : > { %4057 = vmatpush3.bf16.msra.mxu0 %v4362_v51 }
 0x3c2   : > { %4065 = vmatpush3.bf16.msra.mxu1 %v4363_v52  ;;  %4070 = vmatprep.subr.bf16.mxu0 %v4364_v53 }
 0x3c3   : > { %4078 = vmatprep.subr.bf16.mxu1 %v4365_v54 }
 0x3c4   : > { %4059 = vmatmul.mubr.msk.bf16.vlgmr.msra.gmra.mrb[12].mxu0 %vm1309_vm4, %v4960_v41 }
 0x3c5   : > { %4067 = vmatmul.mubr.msk.bf16.vlgmr.msra.gmra.mrb[12].mxu1 %vm1309_vm4, %v4960_v41  ;;  %4071 = vmatpush3.bf16.msra.mxu0 %v4364_v53 }
 0x3c6   : > { %4074 = vmatprep.mubr.msk.bf16.mxu0 %vm1309_vm4, %v4962_v42  ;;  %4079 = vmatpush3.bf16.msra.mxu1 %v4365_v54 }
 0x3c7   : > { %4082 = vmatprep.mubr.msk.bf16.mxu1 %vm1309_vm4, %v4962_v42  ;;  %4072 = vmatprep.subr.bf16.mxu0 %v4366_v55 }
 0x3c8   : > { %4080 = vmatprep.subr.bf16.mxu1 %v4367_v56 }
 0x3c9   : > { %4073 = vmatpush3.bf16.msra.mxu0 %v4366_v55 }
 0x3ca   : > { %4081 = vmatpush3.bf16.msra.mxu1 %v4367_v56  ;;  %4086 = vmatprep.subr.bf16.mxu0 %v4368_v57 }
 0x3cb   : > { %4094 = vmatprep.subr.bf16.mxu1 %v4369_v58 }
 0x3cc   : > { %4075 = vmatmul.mubr.msk.bf16.vlgmr.msra.gmra.mrb[16].mxu0 %vm1309_vm4, %v4960_v41 }
 0x3cd   : > { %4083 = vmatmul.mubr.msk.bf16.vlgmr.msra.gmra.mrb[16].mxu1 %vm1309_vm4, %v4960_v41  ;;  %4087 = vmatpush3.bf16.msra.mxu0 %v4368_v57 }
 0x3ce   : > { %4090 = vmatprep.mubr.msk.bf16.mxu0 %vm1309_vm4, %v4962_v42  ;;  %4095 = vmatpush3.bf16.msra.mxu1 %v4369_v58 }
 0x3cf   : > { %4098 = vmatprep.mubr.msk.bf16.mxu1 %vm1309_vm4, %v4962_v42  ;;  %4088 = vmatprep.subr.bf16.mxu0 %v4370_v59 }
 0x3d0   : > { %4096 = vmatprep.subr.bf16.mxu1 %v4371_v60 }
 0x3d1   : > { %4089 = vmatpush3.bf16.msra.mxu0 %v4370_v59 }
 0x3d2   : > { %4097 = vmatpush3.bf16.msra.mxu1 %v4371_v60 }
 0x3d4   : > { %4091 = vmatmul.mubr.msk.bf16.vlgmr.msra.gmra.mrb[20].mxu0 %vm1309_vm4, %v4960_v41 }
 0x3d5   : > { %4099 = vmatmul.mubr.msk.bf16.vlgmr.msra.gmra.mrb[20].mxu1 %vm1309_vm4, %v4960_v41 }
 0x47f   : > { %v5035_v63 = vpop.f32.mrb[0].mxu0  ;;  %v5037_v0 = vpop.f32.mrb[0].mxu1 }
 0x480   : > { %v1438_v1 = vpop.f32.mrb[1].mxu0  ;;  %v1498_v2 = vpop.f32.mrb[1].mxu1  ;;  %v2145_v52 = vpack.c.bf16 %v5035_v63, %v5035_v63  ;;  %v2147_v55 = vpack.c.bf16 %v5037_v0, %v5037_v0 }
 0x481   : > { %v4013_v3 = vpop.f32.mrb[2].mxu0  ;;  %v4021_v4 = vpop.f32.mrb[2].mxu1 }
 0x482   : > { %v1441_v5 = vpop.f32.mrb[3].mxu0  ;;  %v1501_v6 = vpop.f32.mrb[3].mxu1 }
 0x483   : > { %v2144_v7 = vpack.c.bf16 %v1441_v5, %v1438_v1  ;;  %v2146_v8 = vpack.c.bf16 %v1501_v6, %v1498_v2 }
 0x485   : > { %4106 = vmatprep.mubr.msk.bf16.mxu0 %vm2160_vm5, %v2144_v7  ;;  %4114 = vmatprep.mubr.msk.bf16.mxu1 %vm2160_vm5, %v2146_v8 }
 0x487   : > { %v5041_v9 = vpop.f32.mrb[4].mxu0 }
 0x488   : > { %v5043_v10 = vpop.f32.mrb[4].mxu1  ;;  %v5045_v11 = vpop.f32.mrb[5].mxu0 }
 0x489   : > { %v5047_v12 = vpop.f32.mrb[5].mxu1  ;;  %v4029_v13 = vpop.f32.mrb[6].mxu0 }
 0x48a   : > { %v4037_v14 = vpop.f32.mrb[6].mxu1  ;;  %v1561_v15 = vpop.f32.mrb[7].mxu0 }
 0x48b   : > { %v2148_v16 = vpack.c.bf16 %v1561_v15, %v5045_v11  ;;  %v1621_v17 = vpop.f32.mrb[7].mxu1  ;;  %v2149_v11 = vpack.c.bf16 %v5041_v9, %v5041_v9 }
 0x48c   : > { %v2150_v19 = vpack.c.bf16 %v1621_v17, %v5047_v12  ;;  %v2151_v12 = vpack.c.bf16 %v5043_v10, %v5043_v10  ;;  %v2423_v10 = vlaneseq }
 0x48f   : > { %v4044_v21 = vpop.f32.mrb[8].mxu0 }
 0x490   : > { %v4052_v22 = vpop.f32.mrb[8].mxu1  ;;  %v1694_v23 = vpop.f32.mrb[9].mxu0  ;;  %v2153_v31 = vpack.c.bf16 %v4044_v21, %v4044_v21 }
 0x491   : > { %v1754_v18 = vpop.f32.mrb[9].mxu1  ;;  %v4045_v24 = vpop.f32.mrb[10].mxu0  ;;  %v2155_v29 = vpack.c.bf16 %v4052_v22, %v4052_v22 }
 0x492   : > { %v4053_v25 = vpop.f32.mrb[10].mxu1  ;;  %v1697_v26 = vpop.f32.mrb[11].mxu0  ;;  %v2171_v43 = vsel %vm2160_vm5, %v2153_v31, 0 }
 0x493   : > { %v2152_v28 = vpack.c.bf16 %v1697_v26, %v1694_v23  ;;  %v1757_v30 = vpop.f32.mrb[11].mxu1  ;;  %v2231_v44 = vsel %vm2160_vm5, %v2155_v29, 0  ;;  %v5095_v21 = vpop.permute.xlu0 %2408 }
 0x494   : > { %v2154_v27 = vpack.c.bf16 %v1757_v30, %v1754_v18 }
 0x495   : > { %v2168_v20 = vsel %vm2160_vm5, %v2152_v28, 0  ;;  %4234 = vmatprep.subr.msk.bf16.mxu0 %vm2160_vm5, %v2152_v28 }
 0x496   : > { %v2228_v32 = vsel %vm2160_vm5, %v2154_v27, 0  ;;  %4236 = vmatprep.subr.msk.bf16.mxu1 %vm2160_vm5, %v2154_v27  ;;  %4103 = vmatpush3.bf16.xpose.msra.mxu0 %v2168_v20 }
 0x497   : > { %4111 = vmatpush3.bf16.xpose.msra.mxu1 %v2228_v32  ;;  %v4060_v33 = vpop.f32.mrb[12].mxu0  ;;  %4235 = vmatprep.subr.msk.bf16.mxu0 %vm2160_vm5, %v2153_v31 }
 0x498   : > { %v4068_v34 = vpop.f32.mrb[12].mxu1  ;;  %4237 = vmatprep.subr.msk.bf16.mxu1 %vm2160_vm5, %v2155_v29  ;;  %v1814_v35 = vpop.f32.mrb[13].mxu0  ;;  %v2157_v58 = vpack.c.bf16 %v4060_v33, %v4060_v33 }
 0x499   : > { %v1874_v36 = vpop.f32.mrb[13].mxu1  ;;  %v4061_v37 = vpop.f32.mrb[14].mxu0  ;;  %v2159_v60 = vpack.c.bf16 %v4068_v34, %v4068_v34 }
 0x49a   : > { %v4069_v38 = vpop.f32.mrb[14].mxu1  ;;  %v1817_v39 = vpop.f32.mrb[15].mxu0  ;;  %v2291_v7 = vsel %vm2160_vm5, %v2157_v58, 0 }
 0x49b   : > { %v2156_v40 = vpack.c.bf16 %v1817_v39, %v1814_v35  ;;  %v1877_v41 = vpop.f32.mrb[15].mxu1  ;;  %v2351_v8 = vsel %vm2160_vm5, %v2159_v60, 0 }
 0x49c   : > { %v2158_v42 = vpack.c.bf16 %v1877_v41, %v1874_v36 }
 0x49d   : > { %v2288_v57 = vsel %vm2160_vm5, %v2156_v40, 0 }
 0x49e   : > { %4105 = vmatpush3.bf16.xpose.msra.mxu0 %v2171_v43  ;;  %v2348_v59 = vsel %vm2160_vm5, %v2158_v42, 0 }
 0x49f   : > { %4113 = vmatpush3.bf16.xpose.msra.mxu1 %v2231_v44  ;;  %v4076_v45 = vpop.f32.mrb[16].mxu0  ;;  %4238 = vmatprep.subr.msk.bf16.mxu0 %vm2160_vm5, %v2156_v40 }
 0x4a0   : > { %v4084_v46 = vpop.f32.mrb[16].mxu1  ;;  %4240 = vmatprep.subr.msk.bf16.mxu1 %vm2160_vm5, %v2158_v42  ;;  %v1950_v47 = vpop.f32.mrb[17].mxu0  ;;  %v2596_v13 = vpack.c.bf16 %v4076_v45, %v4076_v45 }
 0x4a1   : > { %v2010_v48 = vpop.f32.mrb[17].mxu1  ;;  %v4077_v49 = vpop.f32.mrb[18].mxu0  ;;  %v2598_v14 = vpack.c.bf16 %v4084_v46, %v4084_v46 }
 0x4a2   : > { %v4085_v50 = vpop.f32.mrb[18].mxu1  ;;  %v1953_v51 = vpop.f32.mrb[19].mxu0  ;;  %v2611_v15 = vsel %vm2609_vm6, %v2596_v13, 0 }
 0x4a3   : > { %v2595_v53 = vpack.c.bf16 %v1953_v51, %v1950_v47  ;;  %v2013_v54 = vpop.f32.mrb[19].mxu1  ;;  %v2668_v9 = vsel %vm2609_vm6, %v2598_v14, 0 }
 0x4a4   : > { %v2597_v56 = vpack.c.bf16 %v2013_v54, %v2010_v48 }
 0x4a5   : > { %4107 = vmatmul.mubr.msk.bf16.vlgmr.msra.gmra.mrb[24].mxu0 %vm2160_vm5, %v2145_v52 }
 0x4a6   : > { %4115 = vmatmul.mubr.msk.bf16.vlgmr.msra.gmra.mrb[24].mxu1 %vm2160_vm5, %v2147_v55  ;;  %4119 = vmatpush3.bf16.xpose.msra.mxu0 %v2288_v57 }
 0x4a7   : > { %4122 = vmatprep.mubr.msk.bf16.mxu0 %vm2160_vm5, %v2148_v16  ;;  %4127 = vmatpush3.bf16.xpose.msra.mxu1 %v2348_v59  ;;  %v5070_v61 = vpop.f32.mrb[20].mxu0  ;;  %v2424_v16 = vshrl.u32 %v2423_v10, 7 }
 0x4a8   : > { %4130 = vmatprep.mubr.msk.bf16.mxu1 %vm2160_vm5, %v2150_v19  ;;  %v5073_v62 = vpop.f32.mrb[20].mxu1  ;;  %4239 = vmatprep.subr.msk.bf16.mxu0 %vm2160_vm5, %v2157_v58  ;;  %v2070_v63 = vpop.f32.mrb[21].mxu0  ;;  %v2428_v19 = vand.u32 127, %v2423_v10 }
 0x4a9   : > { %4241 = vmatprep.subr.msk.bf16.mxu1 %vm2160_vm5, %v2159_v60  ;;  %v2130_v0 = vpop.f32.mrb[21].mxu1  ;;  %v4093_v1 = vpop.f32.mrb[22].mxu0  ;;  %v2426_v17 = vadd.s32 16, %v2424_v16  ;;  %v2425_v36 = vadd.s32 8, %v2424_v16 }
 0x4aa   : > { %v4101_v2 = vpop.f32.mrb[22].mxu1  ;;  %v2073_v3 = vpop.f32.mrb[23].mxu0  ;;  %vm2432_vm8 = vcmp.ge.s32.totalorder %v2428_v19, 17  ;;  %vm2429_vm11 = vcmp.eq.s32.totalorder %v2424_v16, %v2428_v19 }
 0x4ab   : > { %v5077_v4 = vpack.c.bf16 %v2073_v3, %v2070_v63  ;;  %v2133_v5 = vpop.f32.mrb[23].mxu1  ;;  %vm2431_vm7 = vcmp.eq.s32.totalorder %v2426_v17, %v2428_v19  ;;  %vm5111_vm12 = vmor %vm2429_vm11, %vm2432_vm8  ;;  %vm2430_vm13 = vcmp.eq.s32.totalorder %v2425_v36, %v2428_v19 }
 0x4ac   : > { %v5079_v6 = vpack.c.bf16 %v2133_v5, %v2130_v0  ;;  %vm5098_vm9 = vmor %vm2431_vm7, %vm2432_vm8 }
 0x4ad   : > { %vm5124_vm14 = vmor %vm2430_vm13, %vm2432_vm8 }
 0x4ae   : > { %4121 = vmatpush3.bf16.xpose.msra.mxu0 %v2291_v7 }
 0x4af   : > { %4129 = vmatpush3.bf16.xpose.msra.mxu1 %v2351_v8  ;;  %4134 = vmatprep.subr.bf16.mxu0 %v2595_v53 }
 0x4b0   : > { %4142 = vmatprep.subr.bf16.mxu1 %v2597_v56 }
 0x4b5   : > { %4123 = vmatmul.mubr.msk.bf16.vlgmr.msra.gmra.mrb[28].mxu0 %vm2160_vm5, %v2149_v11 }
 0x4b6   : > { %4131 = vmatmul.mubr.msk.bf16.vlgmr.msra.gmra.mrb[28].mxu1 %vm2160_vm5, %v2151_v12  ;;  %4135 = vmatpush3.bf16.msra.mxu0 %v2595_v53 }
 0x4b7   : > { %4143 = vmatpush3.bf16.msra.mxu1 %v2597_v56  ;;  %4242 = vmatprep.subr.msk.bf16.mxu0 %vm2609_vm6, %v2596_v13 }
 0x4b8   : > { %4243 = vmatprep.subr.msk.bf16.mxu1 %vm2609_vm6, %v2598_v14 }
 0x4ba   : > { %4137 = vmatpush3.bf16.msra.mxu0 %v2611_v15 }
 0x4bb   : > { %4145 = vmatpush3.bf16.msra.mxu1 %v2668_v9  ;;  %4150 = vmatprep.subr.bf16.mxu0 %v5077_v4 }
 0x4bc   : > { %4158 = vmatprep.subr.bf16.mxu1 %v5079_v6 }
 0x578   : > { %v4108_v22 = vpop.f32.mrb[24].mxu0 }
 0x579   : > { %v4116_v18 = vpop.f32.mrb[24].mxu1  ;;  %v2207_v24 = vpop.f32.mrb[25].mxu0  ;;  %v2413_v25 = vmul.f32 %v4108_v22, %v5095_v21 }
 0x57a   : > { %v2267_v26 = vpop.f32.mrb[25].mxu1  ;;  %v4109_v28 = vpop.f32.mrb[26].mxu0  ;;  %v2416_v30 = vmul.f32 %v4116_v18, %v5095_v21  ;;  %v2411_v33 = vmul.f32 %v5095_v21, %v2207_v24 }
 0x57b   : > { %v4117_v27 = vpop.f32.mrb[26].mxu1  ;;  %v2210_v31 = vpop.f32.mrb[27].mxu0  ;;  %v2444_v20 = vsel %vm5098_vm9, -1e+30, %v2413_v25  ;;  %v2414_v38 = vmul.f32 %v5095_v21, %v2267_v26 }
 0x57c   : > { %v2270_v29 = vpop.f32.mrb[27].mxu1  ;;  %v2461_v32 = vsel %vm2454_vm10, %v2444_v20, -inf  ;;  %v2447_v34 = vsel %vm5098_vm9, -1e+30, %v2416_v30  ;;  %v2442_v39 = vsel %vm5111_vm12, -1e+30, %v2411_v33  ;;  %v2412_v41 = vmul.f32 %v5095_v21, %v2210_v31 }
 0x57d   : > { %2462 = vmax.xlane.f32.xlu1 %v2461_v32  ;;  %v2470_v37 = vsel %vm2454_vm10, %v2447_v34, -inf  ;;  %v2455_v40 = vsel %vm2454_vm10, %v2442_v39, -inf  ;;  %v2445_v42 = vsel %vm5111_vm12, -1e+30, %v2414_v38  ;;  %v2415_v46 = vmul.f32 %v5095_v21, %v2270_v29 }
 0x57e   : > { %v2464_v45 = vsel %vm2454_vm10, %v2445_v42, -inf  ;;  %v2443_v49 = vsel %vm5124_vm14, -1e+30, %v2412_v41 }
 0x57f   : > { %v2458_v57 = vsel %vm2454_vm10, %v2443_v49, -inf  ;;  %v2446_v60 = vsel %vm5124_vm14, -1e+30, %v2415_v46 }
 0x580   : > { %v2467_v63 = vsel %vm2454_vm10, %v2446_v60, -inf }
 0x581   : > { %2471 = vmax.xlane.f32.xlu1 %v2470_v37 }
 0x585   : > { %2456 = vmax.xlane.f32.xlu1 %v2455_v40 }
 0x588   : > { %v4124_v44 = vpop.f32.mrb[28].mxu0 }
 0x589   : > { %v4132_v47 = vpop.f32.mrb[28].mxu1  ;;  %v2327_v48 = vpop.f32.mrb[29].mxu0  ;;  %2465 = vmax.xlane.f32.xlu1 %v2464_v45  ;;  %v2419_v58 = vmul.f32 %v4124_v44, %v5095_v21 }
 0x58a   : > { %v2422_v50 = vmul.f32 %v4132_v47, %v5095_v21  ;;  %v2387_v51 = vpop.f32.mrb[29].mxu1  ;;  %v4125_v52 = vpop.f32.mrb[30].mxu0  ;;  %v2417_v0 = vmul.f32 %v5095_v21, %v2327_v48 }
 0x58b   : > { %v4133_v53 = vpop.f32.mrb[30].mxu1  ;;  %v2330_v54 = vpop.f32.mrb[31].mxu0  ;;  %v2450_v1 = vsel %vm5098_vm9, -1e+30, %v2419_v58  ;;  %v2420_v3 = vmul.f32 %v5095_v21, %v2387_v51 }
 0x58c   : > { %v2390_v55 = vpop.f32.mrb[31].mxu1  ;;  %v5135_v56 = vsel %vm5098_vm9, -1e+30, %v2422_v50  ;;  %v2479_v2 = vsel %vm2454_vm10, %v2450_v1, -inf  ;;  %v2448_v5 = vsel %vm5111_vm12, -1e+30, %v2417_v0  ;;  %v2418_v8 = vmul.f32 %v5095_v21, %v2330_v54 }
 0x58d   : > { %v2488_v59 = vsel %vm2454_vm10, %v5135_v56, -inf  ;;  %2459 = vmax.xlane.f32.xlu1 %v2458_v57  ;;  %v2473_v7 = vsel %vm2454_vm10, %v2448_v5, -inf  ;;  %v2451_v11 = vsel %vm5111_vm12, -1e+30, %v2420_v3  ;;  %v2421_v13 = vmul.f32 %v5095_v21, %v2390_v55 }
 0x58e   : > { %2489 = vmax.xlane.f32.xlu0 %v2488_v59  ;;  %v2482_v12 = vsel %vm2454_vm10, %v2451_v11, -inf  ;;  %v5159_v14 = vsel %vm5124_vm14, -1e+30, %v2418_v8 }
 0x58f   : > { %v2476_v15 = vsel %vm2454_vm10, %v5159_v14, -inf  ;;  %v5165_v9 = vsel %vm5124_vm14, -1e+30, %v2421_v13 }
 0x590   : > { %v2485_v10 = vsel %vm2454_vm10, %v5165_v9, -inf }
 0x591   : > { %2468 = vmax.xlane.f32.xlu1 %v2467_v63 }
 0x595   : > { %2480 = vmax.xlane.f32.xlu1 %v2479_v2 }
 0x599   : > { %2474 = vmax.xlane.f32.xlu1 %v2473_v7 }
 0x59d   : > { %2483 = vmax.xlane.f32.xlu1 %v2482_v12 }
 0x5a1   : > { %2477 = vmax.xlane.f32.xlu1 %v2476_v15 }
 0x5a5   : > { %2486 = vmax.xlane.f32.xlu1 %v2485_v10 }
 0x60a   : > { %v2463_v16 = vpop.xlane.xlu1 %2462 }
 0x60b   : > { %v2493_v17 = vsub.f32 %v2444_v20, %v2463_v16 }
 0x60d   : > { %v2507_v19 = vmul.f32 1.442695, %v2493_v17 }
 0x60e   : > { %v2472_v21 = vpop.xlane.xlu1 %2471 }
 0x60f   : > { %4384 = vpow2.f32 %v2507_v19  ;;  %v2496_v22 = vsub.f32 %v2447_v34, %v2472_v21 }
 0x611   : > { %v2513_v23 = vmul.f32 1.442695, %v2496_v22 }
 0x612   : > { %v2457_v18 = vpop.xlane.xlu1 %2456 }
 0x613   : > { %4386 = vpow2.f32 %v2513_v23  ;;  %v2491_v24 = vsub.f32 %v2442_v39, %v2457_v18 }
 0x615   : > { %v2503_v25 = vmul.f32 1.442695, %v2491_v24 }
 0x616   : > { %v2466_v26 = vpop.xlane.xlu1 %2465 }
 0x617   : > { %4388 = vpow2.f32 %v2503_v25  ;;  %v2494_v28 = vsub.f32 %v2445_v42, %v2466_v26 }
 0x619   : > { %v5169_v30 = vpop.eup %4384  ;;  %v2509_v27 = vmul.f32 1.442695, %v2494_v28 }
 0x61a   : > { %v2460_v31 = vpop.xlane.xlu1 %2459  ;;  %v2533_v29 = vsel %vm2454_vm10, %v5169_v30, 0.0 }
 0x61b   : > { %4390 = vpow2.f32 %v2509_v27  ;;  %v2492_v20 = vsub.f32 %v2443_v49, %v2460_v31  ;;  %2534 = vadd.xlane.f32.xlu1 %v2533_v29  ;;  %v2490_v49 = vpop.xlane.xlu0 %2489 }
 0x61c   : > { %v2502_v54 = vsub.f32 %v5135_v56, %v2490_v49 }
 0x61d   : > { %v5173_v32 = vpop.eup %4386  ;;  %v2505_v33 = vmul.f32 1.442695, %v2492_v20 }
 0x61e   : > { %v2469_v34 = vpop.xlane.xlu1 %2468  ;;  %v2542_v35 = vsel %vm2454_vm10, %v5173_v32, 0.0  ;;  %v2525_v63 = vmul.f32 1.442695, %v2502_v54 }
 0x61f   : > { %4392 = vpow2.f32 %v2505_v33  ;;  %v2495_v36 = vsub.f32 %v2446_v60, %v2469_v34  ;;  %2543 = vadd.xlane.f32.xlu1 %v2542_v35 }
 0x621   : > { %v5177_v37 = vpop.eup %4388  ;;  %v2511_v38 = vmul.f32 1.442695, %v2495_v36 }
 0x622   : > { %v2481_v39 = vpop.xlane.xlu1 %2480  ;;  %v2527_v40 = vsel %vm2454_vm10, %v5177_v37, 0.0 }
 0x623   : > { %4394 = vpow2.f32 %v2511_v38  ;;  %v2499_v41 = vsub.f32 %v2450_v1, %v2481_v39  ;;  %2528 = vadd.xlane.f32.xlu1 %v2527_v40 }
 0x625   : > { %v5181_v42 = vpop.eup %4390  ;;  %v2519_v43 = vmul.f32 1.442695, %v2499_v41 }
 0x626   : > { %v2475_v44 = vpop.xlane.xlu1 %2474  ;;  %v2536_v45 = vsel %vm2454_vm10, %v5181_v42, 0.0 }
 0x627   : > { %4396 = vpow2.f32 %v2519_v43  ;;  %v2497_v46 = vsub.f32 %v2448_v5, %v2475_v44  ;;  %2537 = vadd.xlane.f32.xlu1 %v2536_v45  ;;  %v2602_v44 = vpack.c.bf16 %v5073_v62, %v5073_v62 }
 0x629   : > { %v4393_v47 = vpop.eup %4392  ;;  %v2515_v48 = vmul.f32 1.442695, %v2497_v46  ;;  %v2782_v45 = vsel %vm2609_vm6, %v2602_v44, 0 }
 0x62a   : > { %v2484_v50 = vpop.xlane.xlu1 %2483  ;;  %v2530_v51 = vsel %vm2454_vm10, %v4393_v47, 0.0 }
 0x62b   : > { %4398 = vpow2.f32 %v2515_v48  ;;  %v2500_v52 = vsub.f32 %v2451_v11, %v2484_v50  ;;  %2531 = vadd.xlane.f32.xlu1 %v2530_v51 }
 0x62d   : > { %v5186_v53 = vpop.eup %4394  ;;  %v2521_v55 = vmul.f32 1.442695, %v2500_v52 }
 0x62e   : > { %v2478_v57 = vpop.xlane.xlu1 %2477  ;;  %v2539_v58 = vsel %vm2454_vm10, %v5186_v53, 0.0 }
 0x62f   : > { %4400 = vpow2.f32 %v2521_v55  ;;  %v2498_v59 = vsub.f32 %v5159_v14, %v2478_v57  ;;  %2540 = vadd.xlane.f32.xlu1 %v2539_v58 }
 0x631   : > { %v5192_v60 = vpop.eup %4396  ;;  %v2517_v0 = vmul.f32 1.442695, %v2498_v59 }
 0x632   : > { %v2487_v1 = vpop.xlane.xlu1 %2486  ;;  %v2551_v2 = vsel %vm2454_vm10, %v5192_v60, 0.0 }
 0x633   : > { %4402 = vpow2.f32 %v2517_v0  ;;  %v2501_v56 = vsub.f32 %v5165_v9, %v2487_v1  ;;  %2552 = vadd.xlane.f32.xlu0 %v2551_v2  ;;  %v2841_v1 = vld [vmem:[%s4789_s4 + $0x4] sm:$0xf] }
 0x634   : > { %4404 = vpow2.f32 %v2525_v63  ;;  %v2840_v63 = vld [vmem:[%s4789_s4] sm:$0xf]  ;;  %v2908_v2 = vsel %vm2609_vm6, %v2841_v1, 0 }
 0x635   : > { %v5197_v3 = vpop.eup %4398  ;;  %v2523_v5 = vmul.f32 1.442695, %v2501_v56  ;;  %v2851_v0 = vsel %vm2609_vm6, %v2840_v63, 0  ;;  %v2842_v56 = vld [vmem:[%s4789_s4 + $0x8] sm:$0xf] }
 0x636   : > { %v2545_v7 = vsel %vm2454_vm10, %v5197_v3, 0.0 }
 0x637   : > { %4406 = vpow2.f32 %v2523_v5  ;;  %2546 = vadd.xlane.f32.xlu1 %v2545_v7 }
 0x639   : > { %v5201_v8 = vpop.eup %4400 }
 0x63a   : > { %v2554_v11 = vsel %vm2454_vm10, %v5201_v8, 0.0 }
 0x63b   : > { %2555 = vadd.xlane.f32.xlu1 %v2554_v11 }
 0x63d   : > { %v5205_v12 = vpop.eup %4402 }
 0x63e   : > { %v2548_v13 = vsel %vm2454_vm10, %v5205_v12, 0.0  ;;  %v5209_v14 = vpop.eup %4404 }
 0x63f   : > { %2549 = vadd.xlane.f32.xlu1 %v2548_v13  ;;  %v2560_v9 = vsel %vm2454_vm10, %v5209_v14, 0.0 }
 0x641   : > { %v5211_v15 = vpop.eup %4406 }
 0x642   : > { %v2557_v10 = vsel %vm2454_vm10, %v5211_v15, 0.0 }
 0x643   : > { %2561 = vadd.xlane.f32.xlu1 %v2560_v9  ;;  %2558 = vadd.xlane.f32.xlu0 %v2557_v10  ;;  %v2965_v9 = vsel %vm2609_vm6, %v2842_v56, 0 }
 0x6a8   : > { %v2535_v16 = vpop.xlane.xlu1 %2534 }
 0x6a9   : > { %4408 = vrcp.f32 %v2535_v16 }
 0x6ac   : > { %v2544_v17 = vpop.xlane.xlu1 %2543 }
 0x6b0   : > { %v2529_v19 = vpop.xlane.xlu1 %2528 }
 0x6b1   : > { %4410 = vrcp.f32 %v2529_v19 }
 0x6b3   : > { %v4409_v18 = vpop.eup %4408 }
 0x6b4   : > { %v2538_v21 = vpop.xlane.xlu1 %2537  ;;  %v2577_v26 = vmul.f32 %v4409_v18, %v5169_v30  ;;  %v2600_v30 = vpack.c.bf16 %v5070_v61, %v5070_v61 }
 0x6b6   : > { %v2588_v38 = vpack.c.bf16 %v2577_v26, %v2577_v26 }
 0x6b8   : > { %v2532_v22 = vpop.xlane.xlu1 %2531 }
 0x6b9   : > { %4412 = vrcp.f32 %v2532_v22 }
 0x6ba   : > { %4414 = vrcp.f32 %v2544_v17 }
 0x6bb   : > { %4416 = vrcp.f32 %v2538_v21  ;;  %v4411_v24 = vpop.eup %4410 }
 0x6bc   : > { %v2541_v23 = vpop.xlane.xlu1 %2540  ;;  %v2575_v31 = vmul.f32 %v4411_v24, %v5177_v37 }
 0x6bd   : > { %4418 = vrcp.f32 %v2541_v23 }
 0x6c0   : > { %v2553_v36 = vpop.xlane.xlu0 %2552 }
 0x6c1   : > { %4420 = vrcp.f32 %v2553_v36 }
 0x6c3   : > { %v4413_v25 = vpop.eup %4412 }
 0x6c4   : > { %v4415_v28 = vpop.eup %4414  ;;  %v2547_v27 = vpop.xlane.xlu1 %2546  ;;  %v2576_v29 = vmul.f32 %v4413_v25, %v4393_v47 }
 0x6c5   : > { %v4417_v20 = vpop.eup %4416  ;;  %v2580_v35 = vmul.f32 %v4415_v28, %v5173_v32  ;;  %4422 = vrcp.f32 %v2547_v27 }
 0x6c6   : > { %v2587_v33 = vpack.c.bf16 %v2576_v29, %v2575_v31  ;;  %v2578_v40 = vmul.f32 %v4417_v20, %v5181_v42  ;;  %v2725_v42 = vsel %vm2609_vm6, %v2600_v30, 0 }
 0x6c7   : > { %v4419_v34 = vpop.eup %4418  ;;  %v2590_v32 = vpack.c.bf16 %v2580_v35, %v2580_v35 }
 0x6c8   : > { %4138 = vmatprep.mubr.msk.bf16.mxu0 %vm2454_vm10, %v2587_v33  ;;  %v2556_v39 = vpop.xlane.xlu1 %2555  ;;  %v2579_v41 = vmul.f32 %v4419_v34, %v5186_v53 }
 0x6c9   : > { %4139 = vmatmul.mubr.msk.bf16.vlgmr.msra.gmra.mrb[32].mxu0 %vm2454_vm10, %v2588_v38 }
 0x6ca   : > { %4151 = vmatpush3.bf16.msra.mxu0 %v5077_v4  ;;  %v2589_v37 = vpack.c.bf16 %v2579_v41, %v2578_v40 }
 0x6cb   : > { %4244 = vmatprep.subr.msk.bf16.mxu0 %vm2609_vm6, %v2600_v30  ;;  %v4421_v46 = vpop.eup %4420 }
 0x6cc   : > { %4146 = vmatprep.mubr.msk.bf16.mxu1 %vm2454_vm10, %v2589_v37  ;;  %v2550_v43 = vpop.xlane.xlu1 %2549  ;;  %v2583_v62 = vmul.f32 %v4421_v46, %v5192_v60 }
 0x6cd   : > { %4424 = vrcp.f32 %v2550_v43  ;;  %4147 = vmatmul.mubr.msk.bf16.vlgmr.msra.gmra.mrb[32].mxu1 %vm2454_vm10, %v2590_v32 }
 0x6ce   : > { %4153 = vmatpush3.bf16.msra.mxu0 %v2725_v42  ;;  %4159 = vmatpush3.bf16.msra.mxu1 %v5079_v6  ;;  %4426 = vrcp.f32 %v2556_v39  ;;  %v2592_v53 = vpack.c.bf16 %v2583_v62, %v2583_v62 }
 0x6cf   : > { %4245 = vmatprep.subr.msk.bf16.mxu1 %vm2609_vm6, %v2602_v44  ;;  %v4423_v47 = vpop.eup %4422  ;;  %4246 = vmatprep.subr.msk.bf16.mxu0 %vm2609_vm6, %v2840_v63 }
 0x6d0   : > { %v2559_v61 = vpop.xlane.xlu0 %2558  ;;  %v2562_v4 = vpop.xlane.xlu1 %2561  ;;  %v2581_v49 = vmul.f32 %v4423_v47, %v5197_v3  ;;  %v2843_v3 = vld [vmem:[%s4789_s4 + $0xc] sm:$0xf] }
 0x6d1   : > { %4428 = vrcp.f32 %v2559_v61  ;;  %v3022_v21 = vsel %vm2609_vm6, %v2843_v3, 0 }
 0x6d2   : > { %4430 = vrcp.f32 %v2562_v4  ;;  %4161 = vmatpush3.bf16.msra.mxu1 %v2782_v45 }
 0x6d3   : > { %4247 = vmatprep.subr.msk.bf16.mxu1 %vm2609_vm6, %v2841_v1 }
 0x6d7   : > { %v4425_v48 = vpop.eup %4424 }
 0x6d8   : > { %v2582_v6 = vmul.f32 %v4425_v48, %v5205_v12  ;;  %v4427_v50 = vpop.eup %4426 }
 0x6d9   : > { %v2584_v55 = vmul.f32 %v4427_v50, %v5201_v8 }
 0x6da   : > { %v2591_v51 = vpack.c.bf16 %v2582_v6, %v2581_v49 }
 0x6db   : > { %v4429_v52 = vpop.eup %4428 }
 0x6dc   : > { %v4431_v54 = vpop.eup %4430  ;;  %4154 = vmatprep.mubr.msk.bf16.mxu0 %vm2454_vm10, %v2591_v51  ;;  %v2585_v57 = vmul.f32 %v4429_v52, %v5211_v15 }
 0x6dd   : > { %v2586_v58 = vmul.f32 %v4431_v54, %v5209_v14  ;;  %4155 = vmatmul.mubr.msk.bf16.vlgmr.msra.gmra.mrb[36].mxu0 %vm2454_vm10, %v2592_v53 }
 0x6de   : > { %v2593_v59 = vpack.c.bf16 %v2585_v57, %v2584_v55  ;;  %4167 = vmatpush3.bf16.msra.mxu0 %v2851_v0 }
 0x6df   : > { %v2594_v60 = vpack.c.bf16 %v2586_v58, %v2586_v58  ;;  %4248 = vmatprep.subr.msk.bf16.mxu0 %vm2609_vm6, %v2842_v56 }
 0x6e0   : > { %4162 = vmatprep.mubr.msk.bf16.mxu1 %vm2454_vm10, %v2593_v59 }
 0x6e1   : > { %4163 = vmatmul.mubr.msk.bf16.vlgmr.msra.gmra.mrb[36].mxu1 %vm2454_vm10, %v2594_v60  ;;  %v3845_v60 = vld [vmem:[%s5531_s10] ss:$0 sm:$0xff] }
 0x6e2   : > { %4173 = vmatpush3.bf16.msra.mxu1 %v2908_v2 }
 0x6e3   : > { %4249 = vmatprep.subr.msk.bf16.mxu1 %vm2609_vm6, %v2843_v3 }
 0x79c   : > { %v4140_v5 = vpop.f32.mrb[32].mxu0 }
 0x79d   : > { %v2647_v7 = vpop.f32.mrb[33].mxu0  ;;  %v2833_v14 = vpack.c.bf16 %v4140_v5, %v4140_v5 }
 0x79e   : > { %v4141_v8 = vpop.f32.mrb[34].mxu0 }
 0x79f   : > { %v2650_v11 = vpop.f32.mrb[35].mxu0 }
 0x7a0   : > { %v2832_v12 = vpack.c.bf16 %v2650_v11, %v2647_v7  ;;  %v4148_v13 = vpop.f32.mrb[32].mxu1  ;;  %v4450_v11 = vld [vmem:[#allocation2] sm:$0xff] }
 0x7a1   : > { %v2704_v15 = vpop.f32.mrb[33].mxu1  ;;  %v2835_v19 = vpack.c.bf16 %v4148_v13, %v4148_v13 }
 0x7a2   : > { %v4149_v10 = vpop.f32.mrb[34].mxu1  ;;  %4168 = vmatprep.mubr.msk.bf16.mxu0 %vm2160_vm5, %v2832_v12 }
 0x7a3   : > { %v2707_v16 = vpop.f32.mrb[35].mxu1  ;;  %4169 = vmatmul.mubr.msk.bf16.vlgmr.msra.gmra.mrb[40].mxu0 %vm2160_vm5, %v2833_v14  ;;  %v4451_v14 = vld [vmem:[#allocation2 + $0x8] sm:$0xff] }
 0x7a4   : > { %v2834_v17 = vpack.c.bf16 %v2707_v16, %v2704_v15  ;;  %4179 = vmatpush3.bf16.msra.mxu0 %v2965_v9  ;;  %v4452_v9 = vld [vmem:[#allocation2 + $0x10] sm:$0xff] }
 0x7a6   : > { %4174 = vmatprep.mubr.msk.bf16.mxu1 %vm2160_vm5, %v2834_v17 }
 0x7a7   : > { %4175 = vmatmul.mubr.msk.bf16.vlgmr.msra.gmra.mrb[40].mxu1 %vm2160_vm5, %v2835_v19 }
 0x7a8   : > { %4185 = vmatpush3.bf16.msra.mxu1 %v3022_v21 }
 0x7b0   : > { %v4156_v22 = vpop.f32.mrb[36].mxu0 }
 0x7b1   : > { %v2761_v23 = vpop.f32.mrb[37].mxu0  ;;  %v2837_v28 = vpack.c.bf16 %v4156_v22, %v4156_v22 }
 0x7b2   : > { %v4157_v18 = vpop.f32.mrb[38].mxu0 }
 0x7b3   : > { %v2764_v24 = vpop.f32.mrb[39].mxu0 }
 0x7b4   : > { %v2836_v25 = vpack.c.bf16 %v2764_v24, %v2761_v23  ;;  %v4164_v26 = vpop.f32.mrb[36].mxu1 }
 0x7b5   : > { %v2818_v27 = vpop.f32.mrb[37].mxu1  ;;  %v2839_v33 = vpack.c.bf16 %v4164_v26, %v4164_v26 }
 0x7b6   : > { %v4165_v31 = vpop.f32.mrb[38].mxu1  ;;  %4180 = vmatprep.mubr.msk.bf16.mxu0 %vm2160_vm5, %v2836_v25 }
 0x7b7   : > { %v2821_v29 = vpop.f32.mrb[39].mxu1  ;;  %4181 = vmatmul.mubr.msk.bf16.vlgmr.msra.gmra.mrb[44].mxu0 %vm2160_vm5, %v2837_v28 }
 0x7b8   : > { %v2838_v20 = vpack.c.bf16 %v2821_v29, %v2818_v27 }
 0x7ba   : > { %4186 = vmatprep.mubr.msk.bf16.mxu1 %vm2160_vm5, %v2838_v20 }
 0x7bb   : > { %4187 = vmatmul.mubr.msk.bf16.vlgmr.msra.gmra.mrb[44].mxu1 %vm2160_vm5, %v2839_v33  ;;  %vm4555_vm5 = vmmov (!%p3860_p1), 0  }
 0x876   : > { %v4170_v34 = vpop.f32.mrb[40].mxu0 }
 0x877   : > { %v2887_v35 = vpop.f32.mrb[41].mxu0  ;;  %v3086_v40 = vsel %vm1309_vm4, %v4170_v34, 0.0 }
 0x878   : > { %v4171_v36 = vpop.f32.mrb[42].mxu0  ;;  %v3072_v37 = vsel %vm1309_vm4, %v2887_v35, 0.0  ;;  %v4372_v35 = vld [vmem:[%s4810_s6] sm:$0xff]  }
 0x879   : > { %v2890_v38 = vpop.f32.mrb[43].mxu0  ;;  %4190 = vmatprep.subr.bf16.mxu0 %v4372_v35  ;;  %v4373_v36 = vld [vmem:[%s4810_s6 + $0x8] sm:$0xff]  }
 0x87a   : > { %v4176_v39 = vpop.f32.mrb[40].mxu1  ;;  %v3079_v4 = vsel %vm1309_vm4, %v2890_v38, 0.0  ;;  %4191 = vmatpush3.bf16.msra.mxu0 %v4372_v35 }
 0x87b   : > { %v3087_v41 = vsel %vm1309_vm4, %v4176_v39, 0.0  ;;  %v2944_v30 = vpop.f32.mrb[41].mxu1  ;;  %4192 = vmatprep.subr.bf16.mxu0 %v4373_v36 }
 0x87c   : > { %v3088_v32 = vadd.f32 %v3087_v41, %v3086_v40  ;;  %v3073_v43 = vsel %vm1309_vm4, %v2944_v30, 0.0  ;;  %v4177_v42 = vpop.f32.mrb[42].mxu1 }
 0x87d   : > { %v3074_v44 = vadd.f32 %v3073_v43, %v3072_v37  ;;  %v2947_v61 = vpop.f32.mrb[43].mxu1 }
 0x87e   : > { %v3080_v45 = vsel %vm1309_vm4, %v2947_v61, 0.0  ;;  %4193 = vmatpush3.bf16.msra.mxu0 %v4373_v36  ;;  %v3846_v61 = vld [vmem:[%s5532_s24] ss:$0 sm:$0xff] }
 0x87f   : > { %v3081_v46 = vadd.f32 %v3080_v45, %v3079_v4 }
 0x88a   : > { %v4182_v47 = vpop.f32.mrb[44].mxu0 }
 0x88b   : > { %v3089_v48 = vsel %vm1309_vm4, %v4182_v47, 0.0  ;;  %v3001_v62 = vpop.f32.mrb[45].mxu0 }
 0x88c   : > { %v3090_v49 = vadd.f32 %v3089_v48, %v3088_v32  ;;  %v3075_v6 = vsel %vm1309_vm4, %v3001_v62, 0.0  ;;  %v4183_v50 = vpop.f32.mrb[46].mxu0  ;;  %v3847_v62 = vld [vmem:[%s5533_s23] ss:$0 sm:$0xff] }
 0x88d   : > { %v3076_v51 = vadd.f32 %v3075_v6, %v3074_v44  ;;  %v3004_v52 = vpop.f32.mrb[47].mxu0 }
 0x88e   : > { %v3082_v53 = vsel %vm1309_vm4, %v3004_v52, 0.0  ;;  %v4188_v54 = vpop.f32.mrb[44].mxu1 }
 0x88f   : > { %v3083_v55 = vadd.f32 %v3082_v53, %v3081_v46  ;;  %v3091_v57 = vsel %vm1309_vm4, %v4188_v54, 0.0  ;;  %v3058_v58 = vpop.f32.mrb[45].mxu1 }
 0x890   : > { %v3092_v59 = vadd.f32 %v3091_v57, %v3090_v49  ;;  %v3077_v63 = vsel %vm1309_vm4, %v3058_v58, 0.0  ;;  %v4189_v0 = vpop.f32.mrb[46].mxu1  ;;  %v4374_v57 = vld [vmem:[%s4820_s19] sm:$0xff]   ;;  %v4375_v58 = vld [vmem:[%s4820_s19 + $0x8] sm:$0xff]  }
 0x891   : > { %v3078_v1 = vadd.f32 %v3077_v63, %v3076_v51  ;;  %v3061_v2 = vpop.f32.mrb[47].mxu1  ;;  %4198 = vmatprep.subr.bf16.mxu1 %v4374_v57  ;;  %v3848_v63 = vld [vmem:[%s970_s20] ss:$0 sm:$0xff] }
 0x892   : > { %v3084_v56 = vsel %vm1309_vm4, %v3061_v2, 0.0  ;;  %v3102_v3 = vadd.f32 %v3845_v60, %v3092_v59  ;;  %4199 = vmatpush3.bf16.msra.mxu1 %v4374_v57  ;;  %v4376_v59 = vld [vmem:[%s4820_s19 + $0x10] sm:$0xff]  }
 0x893   : > { %v3100_v5 = vadd.f32 %v3845_v60, %v3078_v1  ;;  %v3085_v7 = vadd.f32 %v3084_v56, %v3083_v55  ;;  %4200 = vmatprep.subr.bf16.mxu1 %v4375_v58 }
 0x894   : > { %v5289_v10 = vadd.f32 %v4452_v9, %v3102_v3 }
 0x895   : > { %v3101_v8 = vadd.f32 %v3845_v60, %v3085_v7  ;;  %v5283_v12 = vadd.f32 %v4450_v11, %v3100_v5  ;;  %v4377_v60 = vld [vmem:[%s4820_s19 + $0x18] sm:$0xff]  }
 0x896   : > { %v3114_v17 = vsel %vm1309_vm4, %v5289_v10, 0.0  ;;  %4201 = vmatpush3.bf16.msra.mxu1 %v4375_v58 }
 0x897   : > { %v3108_v13 = vsel %vm1309_vm4, %v5283_v12, 0.0  ;;  %v5287_v15 = vadd.f32 %v4451_v14, %v3101_v8  ;;  %4202 = vmatprep.subr.bf16.mxu1 %v4376_v59 }
 0x898   : > { %3109 = vadd.xlane.f32.xlu0 %v3108_v13 }
 0x899   : > { %v3111_v16 = vsel %vm1309_vm4, %v5287_v15, 0.0 }
 0x89a   : > { %3112 = vadd.xlane.f32.xlu1 %v3111_v16  ;;  %4203 = vmatpush3.bf16.msra.mxu1 %v4376_v59 }
 0x89b   : > { %4204 = vmatprep.subr.bf16.mxu1 %v4377_v60 }
 0x89c   : > { %3115 = vadd.xlane.f32.xlu0 %v3114_v17 }
 0x89e   : > { %4205 = vmatpush3.bf16.msra.mxu1 %v4377_v60 }
 0x925   : > { %v3110_v19 = vpop.xlane.xlu0 %3109 }
 0x926   : > { %v3117_v21 = vmul.f32 0.03125, %v3110_v19 }
 0x927   : > { %v3113_v22 = vpop.xlane.xlu1 %3112 }
 0x928   : > { %v3120_v23 = vsub.f32 %v5283_v12, %v3117_v21  ;;  %v3118_v18 = vmul.f32 0.03125, %v3113_v22 }
 0x929   : > { %v3116_v24 = vpop.xlane.xlu0 %3115 }
 0x92a   : > { %v3121_v25 = vsub.f32 %v5287_v15, %v3118_v18  ;;  %v3119_v26 = vmul.f32 0.03125, %v3116_v24  ;;  %v3123_v28 = vmul.f32 %v3120_v23, %v3120_v23 }
 0x92c   : > { %v3122_v27 = vsub.f32 %v5289_v10, %v3119_v26  ;;  %v3126_v31 = vsel %vm1309_vm4, %v3123_v28, 0.0  ;;  %v3124_v29 = vmul.f32 %v3121_v25, %v3121_v25 }
 0x92d   : > { %3127 = vadd.xlane.f32.xlu1 %v3126_v31 }
 0x92e   : > { %v3129_v20 = vsel %vm1309_vm4, %v3124_v29, 0.0  ;;  %v3125_v33 = vmul.f32 %v3122_v27, %v3122_v27 }
 0x92f   : > { %3130 = vadd.xlane.f32.xlu0 %v3129_v20 }
 0x930   : > { %v3132_v34 = vsel %vm1309_vm4, %v3125_v33, 0.0 }
 0x931   : > { %3133 = vadd.xlane.f32.xlu1 %v3132_v34 }
 0x9ba   : > { %v3128_v38 = vpop.xlane.xlu1 %3127 }
 0x9bb   : > { %v3135_v39 = vmul.f32 0.03125, %v3128_v38 }
 0x9bc   : > { %v3131_v40 = vpop.xlane.xlu0 %3130 }
 0x9bd   : > { %v3138_v41 = vadd.f32 1e-05, %v3135_v39  ;;  %v3136_v30 = vmul.f32 0.03125, %v3131_v40 }
 0x9be   : > { %v3134_v37 = vpop.xlane.xlu1 %3133 }
 0x9bf   : > { %4432 = vrsqrt.f32 %v3138_v41  ;;  %v3139_v32 = vadd.f32 1e-05, %v3136_v30  ;;  %v3137_v43 = vmul.f32 0.03125, %v3134_v37 }
 0x9c1   : > { %4434 = vrsqrt.f32 %v3139_v32  ;;  %v3140_v42 = vadd.f32 1e-05, %v3137_v43 }
 0x9c3   : > { %4436 = vrsqrt.f32 %v3140_v42 }
 0x9c9   : > { %v4433_v44 = vpop.eup %4432 }
 0x9ca   : > { %v3144_v4 = vmul.f32 %v4433_v44, %v3120_v23 }
 0x9cb   : > { %v4435_v45 = vpop.eup %4434 }
 0x9cc   : > { %v3145_v46 = vmul.f32 %v4435_v45, %v3121_v25  ;;  %v3153_v47 = vmul.f32 %v3846_v61, %v3144_v4 }
 0x9cd   : > { %v4437_v48 = vpop.eup %4436 }
 0x9ce   : > { %v3146_v49 = vmul.f32 %v4437_v48, %v3122_v27  ;;  %v3154_v6 = vmul.f32 %v3846_v61, %v3145_v46  ;;  %v3162_v51 = vadd.f32 %v3847_v62, %v3153_v47 }
 0x9d0   : > { %v3155_v50 = vmul.f32 %v3846_v61, %v3146_v49  ;;  %v3163_v52 = vadd.f32 %v3847_v62, %v3154_v6 }
 0x9d2   : > { %v3165_v53 = vpack.c.bf16 %v3163_v52, %v3162_v51  ;;  %v3164_v54 = vadd.f32 %v3847_v62, %v3155_v50 }
 0x9d4   : > { %4194 = vmatprep.mubr.msk.bf16.mxu0 %vm1309_vm4, %v3165_v53  ;;  %v3166_v55 = vpack.c.bf16 %v3164_v54, %v3164_v54 }
 0x9d6   : > { %4195 = vmatmul.mubr.msk.bf16.vlgmr.msra.gmra.mrb[48].mxu0 %vm1309_vm4, %v3166_v55 }
 0xaa9   : > { %v4196_v0 = vpop.f32.mrb[48].mxu0 }
 0xaaa   : > { %v5324_v1 = vadd.f32 %v4196_v0, %v3848_v63  ;;  %v3230_v2 = vpop.f32.mrb[49].mxu0 }
 0xaab   : > { %v5326_v56 = vadd.f32 %v3848_v63, %v3230_v2  ;;  %v4197_v3 = vpop.f32.mrb[50].mxu0 }
 0xaac   : > { %v5329_v5 = vmul.f32 0.70710677, %v5324_v1  ;;  %v3233_v7 = vpop.f32.mrb[51].mxu0 }
 0xaad   : > { %v5332_v8 = vmul.f32 0.70710677, %v5326_v56  ;;  %v5334_v11 = vadd.f32 %v3848_v63, %v3233_v7 }
 0xaae   : > { %v3252_v13 = vand.u32 2147483647, %v5329_v5  ;;  %vm3312_vm15 = vcmp.ge.f32.partialorder %v5329_v5, 0.0 }
 0xaaf   : > { %v3250_v14 = vand.u32 2147483647, %v5332_v8  ;;  %v5339_v9 = vmul.f32 0.70710677, %v5334_v11  ;;  %vm3310_vm0 = vcmp.ge.f32.partialorder %v5332_v8, 0.0 }
 0xab0   : > { %v3255_v16 = vmul.f32 0.3275911, %v3252_v13  ;;  %v3294_v24 = vsub.f32 0.0, %v3252_v13 }
 0xab1   : > { %v3253_v17 = vmul.f32 0.3275911, %v3250_v14  ;;  %v3251_v19 = vand.u32 2147483647, %v5339_v9  ;;  %v3292_v25 = vsub.f32 0.0, %v3250_v14  ;;  %vm3311_vm1 = vcmp.ge.f32.partialorder %v5339_v9, 0.0 }
 0xab2   : > { %v3258_v21 = vadd.f32 1.0, %v3255_v16  ;;  %v3297_v28 = vmul.f32 %v3294_v24, %v3252_v13  ;;  %v3246_v24 = vmul.f32 0.5, %v5324_v1  ;;  %v3853_v9 = vld [vmem:[%s978_s21] ss:$0 sm:$0xff] }
 0xab3   : > { %v3256_v22 = vadd.f32 1.0, %v3253_v17  ;;  %v3254_v23 = vmul.f32 0.3275911, %v3251_v19  ;;  %v3293_v27 = vsub.f32 0.0, %v3251_v19  ;;  %v3295_v20 = vmul.f32 %v3292_v25, %v3250_v14 }
 0xab4   : > { %4438 = vrcp.f32 %v3258_v21  ;;  %v3302_v36 = vmul.f32 1.442695, %v3297_v28  ;;  %v3245_v28 = vmul.f32 0.5, %v5334_v11 }
 0xab5   : > { %4440 = vrcp.f32 %v3256_v22  ;;  %v3257_v18 = vadd.f32 1.0, %v3254_v23  ;;  %v3296_v39 = vmul.f32 %v3293_v27, %v3251_v19  ;;  %v3298_v41 = vmul.f32 1.442695, %v3295_v20 }
 0xab7   : > { %4442 = vrcp.f32 %v3257_v18  ;;  %v3300_v44 = vmul.f32 1.442695, %v3296_v39 }
 0xab8   : > { %4444 = vpow2.f32 %v3302_v36 }
 0xab9   : > { %4446 = vpow2.f32 %v3298_v41 }
 0xaba   : > { %4448 = vpow2.f32 %v3300_v44 }
 0xabe   : > { %v4439_v26 = vpop.eup %4438 }
 0xabf   : > { %v4441_v31 = vpop.eup %4440  ;;  %v3267_v29 = vmul.f32 1.0614054, %v4439_v26 }
 0xac0   : > { %v3265_v33 = vmul.f32 1.0614054, %v4441_v31 }
 0xac1   : > { %v3270_v34 = vadd.f32 -1.4531521, %v3267_v29  ;;  %v4443_v35 = vpop.eup %4442 }
 0xac2   : > { %v3268_v38 = vadd.f32 -1.4531521, %v3265_v33  ;;  %v3266_v30 = vmul.f32 1.0614054, %v4443_v35  ;;  %v4445_v55 = vpop.eup %4444 }
 0xac3   : > { %v3273_v40 = vmul.f32 %v4439_v26, %v3270_v34  ;;  %v4447_v58 = vpop.eup %4446 }
 0xac4   : > { %v3271_v37 = vmul.f32 %v4441_v31, %v3268_v38  ;;  %v3269_v43 = vadd.f32 -1.4531521, %v3266_v30  ;;  %v4449_v3 = vpop.eup %4448 }
 0xac5   : > { %v3276_v32 = vadd.f32 1.4214138, %v3273_v40 }
 0xac6   : > { %v3274_v42 = vadd.f32 1.4214138, %v3271_v37  ;;  %v3272_v4 = vmul.f32 %v4443_v35, %v3269_v43  ;;  %v4453_v43 = vld [vmem:[%s5536_s2] sm:$0xff] (!%p3860_p1)  }
 0xac7   : > { %v3279_v61 = vmul.f32 %v4439_v26, %v3276_v32 }
 0xac8   : > { %v3277_v45 = vmul.f32 %v4441_v31, %v3274_v42  ;;  %v3275_v47 = vadd.f32 1.4214138, %v3272_v4  ;;  %v4554_v42 = vmov (!%p3860_p1), 0.0  }
 0xac9   : > { %v3282_v46 = vadd.f32 -0.28449672, %v3279_v61  ;;  %4210 = vmatprep.subr.bf16.mxu0 (!%p3860_p1), %v4554_v42  ;;  %4214 = vmatprep.mubr.msk.bf16.mxu0 (!%p3860_p1), %vm4555_vm5, %v4554_v42 }
 0xaca   : > { %v3280_v48 = vadd.f32 -0.28449672, %v3277_v45  ;;  %v3278_v49 = vmul.f32 %v4443_v35, %v3275_v47  ;;  %4211 = vmatpush3.bf16.msra.mxu0 (!%p3860_p1), %v4453_v43 }
 0xacb   : > { %v3285_v62 = vmul.f32 %v4439_v26, %v3282_v46  ;;  %4212 = vmatprep.subr.bf16.mxu0 (!%p3860_p1), %v4554_v42  ;;  %v3431_v46 = vld [vmem:[%s5538_s11] sm:$0x1] (!%p3860_p1) }
 0xacc   : > { %v3283_v6 = vmul.f32 %v4441_v31, %v3280_v48  ;;  %v3281_v51 = vadd.f32 -0.28449672, %v3278_v49  ;;  %v3432_v48 = vld [vmem:[%s5539_s7] sm:$0x1] (!%p3860_p1) }
 0xacd   : > { %v3288_v50 = vadd.f32 0.2548296, %v3285_v62 }
 0xace   : > { %v3286_v52 = vadd.f32 0.2548296, %v3283_v6  ;;  %v3284_v54 = vmul.f32 %v4443_v35, %v3281_v51 }
 0xacf   : > { %v3291_v53 = vmul.f32 %v4439_v26, %v3288_v50  ;;  %v3244_v26 = vmul.f32 0.5, %v5326_v56  ;;  %v3454_v50 = vld [vmem:[%s5540_s1] sm:$0x1] (!%p3860_p1) }
 0xad0   : > { %v3289_v57 = vmul.f32 %v4441_v31, %v3286_v52  ;;  %v3287_v60 = vadd.f32 0.2548296, %v3284_v54 }
 0xad1   : > { %v3306_v59 = vmul.f32 %v4445_v55, %v3291_v53 }
 0xad2   : > { %v3304_v63 = vmul.f32 %v4447_v58, %v3289_v57  ;;  %v3290_v2 = vmul.f32 %v4443_v35, %v3287_v60 }
 0xad3   : > { %v3309_v0 = vsub.f32 1.0, %v3306_v59 }
 0xad4   : > { %v3307_v7 = vsub.f32 1.0, %v3304_v63  ;;  %v3305_v14 = vmul.f32 %v4449_v3, %v3290_v2 }
 0xad5   : > { %v3315_v13 = vsub.f32 0.0, %v3309_v0 }
 0xad6   : > { %v3313_v16 = vsub.f32 0.0, %v3307_v7  ;;  %v3308_v19 = vsub.f32 1.0, %v3305_v14 }
 0xad7   : > { %v3318_v17 = vsel %vm3312_vm15, %v3309_v0, %v3315_v13 }
 0xad8   : > { %v3316_v21 = vsel %vm3310_vm0, %v3307_v7, %v3313_v16  ;;  %v3321_v22 = vadd.f32 1.0, %v3318_v17  ;;  %v3314_v23 = vsub.f32 0.0, %v3308_v19 }
 0xad9   : > { %v3319_v18 = vadd.f32 1.0, %v3316_v21 }
 0xada   : > { %v3317_v25 = vsel %vm3311_vm1, %v3308_v19, %v3314_v23  ;;  %v3324_v27 = vmul.f32 %v3321_v22, %v3246_v24 }
 0xadb   : > { %v3320_v5 = vadd.f32 1.0, %v3317_v25  ;;  %v3322_v31 = vmul.f32 %v3319_v18, %v3244_v26 }
 0xadc   : > { %v3326_v20 = vpack.c.bf16 %v3324_v27, %v3324_v27 }
 0xadd   : > { %v3323_v29 = vmul.f32 %v3320_v5, %v3245_v28 }
 0xadf   : > { %v3325_v8 = vpack.c.bf16 %v3323_v29, %v3322_v31 }
 0xae1   : > { %4206 = vmatprep.mubr.msk.bf16.mxu1 %vm3366_vm2, %v3325_v8 }
 0xae2   : > { %4207 = vmatmul.mubr.msk.bf16.vlgmr.msra.gmra.mrb[48].mxu1 %vm3366_vm2, %v3326_v20 }
 0xbb5   : > { %v4208_v1 = vpop.f32.mrb[48].mxu1 }
 0xbb6   : > { %v3416_v33 = vadd.f32 %v4208_v1, %v3853_v9  ;;  %v3407_v34 = vpop.f32.mrb[49].mxu1 }
 0xbb7   : > { %v3408_v56 = vadd.f32 %v3853_v9, %v3407_v34  ;;  %v4209_v35 = vpop.f32.mrb[50].mxu1  ;;  %3430 = sbr.rel (%p3860_p1) target bundleno = 3533 (0xdcd), region = 124 }
 0xbb8   : > { %v3423_v11 = vadd.f32 %v3416_v33, %v5289_v10  ;;  %v3410_v36 = vpop.f32.mrb[51].mxu1 }
 0xbb9   : > { %v3421_v38 = vadd.f32 %v3408_v56, %v5283_v12  ;;  %v3411_v39 = vadd.f32 %v3853_v9, %v3410_v36 }
 0xbba   : > { %3426 = vst.msk [vmem:[#allocation2 + $0x10] sm:$0xff] %vm1309_vm4, %v3423_v11 }
 0xbbb   : > { %3424 = vst.msk [vmem:[#allocation2] sm:$0xff] %vm1309_vm4, %v3421_v38  ;;  %v3422_v40 = vadd.f32 %v3411_v39, %v5287_v15  ;;  %v3434_v41 = vsel (!%p3860_p1), %vm3433_vm3, %v3421_v38, 0.0  ;;  %v4454_v15 = vld [vmem:[%s5537_s3 + $0x8] sm:$0xff] (!%p3860_p1)  }
 0xbbc   : > { %3435 = vadd.xlane.f32.xlu0 (!%p3860_p1), %v3434_v41  ;;  %4213 = vmatpush3.bf16.msra.mxu0 (!%p3860_p1), %v4454_v15 }
 0xbbd   : > { %3425 = vst.msk [vmem:[#allocation2 + $0x8] sm:$0xff] %vm1309_vm4, %v3422_v40 }
 0xc49   : > { %v3436_v30 = vpop.xlane.xlu0 %3435 }
 0xc4a   : > { %v3437_v10 = vmul.f32 0.03125, %v3436_v30 }
 0xc4c   : > { %v3438_v37 = vsub.f32 %v3421_v38, %v3437_v10 }
 0xc4e   : > { %v3439_v32 = vmul.f32 %v3438_v37, %v3438_v37 }
 0xc50   : > { %v3440_v12 = vsel %vm3433_vm3, %v3439_v32, 0.0 }
 0xc51   : > { %3441 = vadd.xlane.f32.xlu0 %v3440_v12 }
 0xcde   : > { %v3442_v44 = vpop.xlane.xlu0 %3441 }
 0xcdf   : > { %v3443_v61 = vmul.f32 0.03125, %v3442_v44 }
 0xce1   : > { %v3444_v4 = vadd.f32 1e-05, %v3443_v61 }
 0xce3   : > { %4455 = vrsqrt.f32 %v3444_v4 }
 0xced   : > { %v4456_v45 = vpop.eup %4455 }
 0xcee   : > { %v3446_v47 = vmul.f32 %v4456_v45, %v3438_v37 }
 0xcf0   : > { %v3447_v62 = vmul.f32 %v3446_v47, %v3431_v46 }
 0xcf2   : > { %v3448_v49 = vadd.f32 %v3447_v62, %v3432_v48 }
 0xcf4   : > { %v3449_v6 = vpack.c.bf16 %v3448_v49, %v3448_v49 }
 0xcf6   : > { %4215 = vmatmul.mubr.msk.bf16.vlgmr.msra.gmra.mrb[0].mxu0 %vm1309_vm4, %v3449_v6 }
 0xdc9   : > { %v3504_v51 = vpop.f32.mrb[0].mxu0 }
 0xdca   : > { %v3505_v52 = vadd.f32 %v3504_v51, %v3454_v50  ;;  %v4216_v53 = vpop.f32.mrb[1].mxu0 }
 0xdcb   : > { %v3507_v54 = vpop.f32.mrb[2].mxu0 }
 0xdcc   : > { %3510 = vst [vmem:[%s4828_s9] sm:$0x1] %v3505_v52  ;;  %v4217_v55 = vpop.f32.mrb[3].mxu0 }
 0xdcd PF: > { %s5541_s0 = sld [smem:[#allocation9_spill]]  ;;  %s5543_s21 = sld [smem:[#allocation35_spill]] }
 0xdce   : > { %s3524_s2 = sshll.u32 %s4828_s9, 4  ;;  %s5544_s29 = sand.u32 1, %s4527_s26   ;;  %s3525_s2 = int_to_ptr.vmem [resolvable:$true] %s3524_s2 }
 0xdcf   : > { %s3512_s4 = scalar_lea.sflag [#allocation4], %s5544_s29  ;;  %s4457_s27 = scalar_lea.vmem %s3525_s2, 16 }
 0xdd0   : > { %p4458_p2 = scmp.ne.s32.totalorder %s3525_s2, %s4457_s27  ;;  %s4556_s10 = smov [#allocation3]  }
 0xdd1   : > { %s4461_s11 = sshll.u32 %s4556_s10, 4  ;;  %s4462_s11 = int_to_ptr.vmem [resolvable:$false] %s4461_s11 }
 0xdd2   : > { %p4459_p4 = pnand %p4458_p2, %p4731_p3  ;;  %s4463_s6 = scalar_lea.vmem %s4462_s11, 32 }
 0xdd3   : > { %s3864_s20 = sshll.u32 %s5541_s0, 4  ;;  %p4464_p6 = scmp.lt.s32.totalorder %s3525_s2, %s4462_s11 }
 0xdd4   : > { %s5381_s25 = scalar_lea.hbm %s5543_s21, %s3864_s20  ;;  %p4460_p5 = pneg %p4459_p4 }
 0xdd5   : > { %p4465_p7 = scmp.lt.s32.totalorder %s4463_s6, %s4457_s27 }
 0xdd7   : > { %p4466_p8 = por %p4465_p7, %p4464_p6 }
 0xdd9   : > { %p4467_p10 = pnand %p4466_p8, %p4460_p5 }
 0xddb   : > { %4470 = shalt.err (!%p4467_p10)
}
 0xddc   : > { %s4471_s9 = scalar_lea.hbm %s5381_s25, 16  ;;  %s4475_s8 = scalar_lea.hbm %s5543_s21, 32 }
 0xddd   : > { %p4472_p11 = scmp.ne.s32.totalorder %s5381_s25, %s4471_s9  ;;  %p4476_p0 = scmp.lt.u32.totalorder %s5381_s25, %s5543_s21 }
 0xdde   : > { %p4477_p1 = scmp.lt.u32.totalorder %s4475_s8, %s4471_s9  ;;  %p4479_p4 = scmp.lt.u32.totalorder %s4471_s9, %s5381_s25 }
 0xddf   : > { %p4473_p12 = pnand %p4472_p11, %p4731_p3 }
 0xde0   : > { %p4478_p2 = por %p4477_p1, %p4476_p0 }
 0xde1   : > { %p4474_p13 = pneg %p4473_p12 }
 0xde2   : > { %p4480_p5 = por %p4479_p4, %p4478_p2 }
 0xde4   : > { %p4481_p6 = pnand %p4480_p5, %p4474_p13 }
 0xde6   : > { %4484 = shalt.err (!%p4481_p6)
}
 0xde7   : > { %4251 = dma.vmem_to_hbm [thread:$0]  (%p4731_p3), %s3525_s2, 16, %s5381_s25, %s3512_s4  }
 0xde8 PF: > { %s5545_s0 = sld [smem:[#allocation12_spill]]  ;;  %s5546_s20 = sld [smem:[#allocation6_spill]] }
 0xdee   : > { %p4257_p7 = scmp.ge.s32.totalorder %s5545_s0, 2  ;;  %s3536_s5 = sand.u32 1, %s5546_s20  }
 0xdef   : > { %s3537_s29 = scalar_lea.sflag [#allocation4], %s3536_s5 }
 0xdf0   : > { %p4254_p8 = pnand %p4257_p7, %p4741_p9 }
 0xdf2   : > { %4518 = dma.done.wait (!%p4254_p8), %s3537_s29, 16  }
 0xdf3   : > { %4520 = vsyncadd (!%p4254_p8), %s3537_s29, 4294967280  ;;  %s37_s0 = sadd.s32 1, %s5545_s0   ;;  %s5548_s27 = sld [smem:[#allocation7_spill]] }
 0xdf4   : > { %p34_p10 = scmp.ge.s32.totalorder %s37_s0, 6   ;;  %s5549_s10 = sld [smem:[#allocation17_spill]] }
 0xdf5   : > { %s5550_s28 = sld [smem:[#allocation10_spill]]  ;;  %s5551_s6 = sld [smem:[#allocation11_spill]] }
 0xdf6   : > { %s5552_s2 = sld [smem:[#allocation13_spill]]  ;;  %s5553_s29 = sld [smem:[#allocation15_spill]] }
 0xdf7   : > { %s5554_s5 = smov %s4527_s26  ;;  %36 = sbr.rel (!%p34_p10) target bundleno = 24 (0x18), region = 201 }
 0xdf9   : > { %s5555_s26 = smov %s5548_s27 }
 0xdfa   : > { %s5556_s27 = smov %s5549_s10 }
 0xdfe   :  { %3541 = vsyncpa [#allocation4], 1 }
 0xdff   :  { %3543 = vsyncpa [#allocation4 + $0x1], 1 }

</bundles_post_ra>
